<compile_context>
chip_gen: v7x
topology: tpu7x:2x2x1
jax: 0.10.0
libtpu: 0.0.40
codegen_flags: <defaults>
</compile_context>

<pallas_src>
import functools

import jax
import jax.numpy as jnp
import numpy as np
from jax import lax
from jax.experimental import pallas as pl
from jax.experimental.pallas import tpu as pltpu


def _round_up(v, m):
    return ((v + m - 1) // m) * m


def _vmem_capacity_bytes():
    try:
        return int(pltpu.get_tpu_info().vmem_capacity_bytes)
    except Exception:
        return 64 << 20                       # conservative (v7x physical VMEM)


def _pick_blocks(N, C, HW_p, x_itemsize, target_bytes):
    """Pick (batch block, channel chunk) so the resident footprint — including
    Pallas double-buffering — stays inside `target_bytes`."""
    row_bytes = HW_p * 4                      # one f32 (1, HW_p) row
    # 2x double-buffered output + sum/max scratch = 4 f32 rows per batch elem;
    # reserve ~1/3 of the budget for them.
    b_budget = max(1, target_bytes // (3 * 4 * row_bytes))
    if N <= 8:
        b_blk = N                             # block == full batch dim (legal)
    else:
        b_blk = min(64, b_budget, N)
        b_blk = max(8, (b_blk // 8) * 8)      # sublane-aligned, never whole-N
        if N >= 16:
            # keep >= 2 steps on the parallel batch axis (v7x has 2 TCs)
            half = max(8, (((N + 1) // 2) // 8) * 8)
            b_blk = min(b_blk, half)

    # channel chunk: ~1/2 of the budget for the (double-buffered) input block
    in_budget = max(1, target_bytes // 2)
    cc_cap = max(1, in_budget // (2 * b_blk * HW_p * x_itemsize))
    cc_cap = min(cc_cap, 256)
    divisors = [d for d in range(1, C + 1) if C % d == 0]
    aligned = [d for d in divisors if (d % 8 == 0 or d == C) and d <= cc_cap]
    if aligned:
        cc = max(aligned)
    else:
        fit = [d for d in divisors if d <= cc_cap]
        cc = max(fit) if fit else 1
    return b_blk, cc


def _spatial_attn_kernel(w_ref, mask_ref, x_ref, o_ref, sum_ref, max_ref,
                         *, C, W, K, P, HW_p, BC):
    c_step = pl.program_id(1)

    # ---- init running sum / max on the first channel chunk -----------------
    @pl.when(c_step == 0)
    def _init():
        sum_ref[...] = jnp.zeros_like(sum_ref)
        max_ref[...] = jnp.full_like(max_ref, -jnp.inf)

    # ---- channel-chunk reduction (f32 accumulation) -------------------------
    xc = x_ref[...].astype(jnp.float32)                     # (B_blk, CC, HW_p)
    sum_ref[...] = sum_ref[...] + jnp.sum(xc, axis=1)
    max_ref[...] = jnp.maximum(max_ref[...], jnp.max(xc, axis=1))

    # ---- last channel chunk: factorized KxK conv + sigmoid + store ----------
    @pl.when(c_step == pl.num_programs(1) - 1)
    def _finalize():
        b_blk = o_ref.shape[0]
        n_bchunks = b_blk // BC
        inv_c = 1.0 / C

        def lane_roll(v, s):
            s = s % HW_p
            if s == 0:
                return v
            return pltpu.roll(v, shift=s, axis=1)           # XLU lane rotation

        def conv_chunk(bs):
            avg = sum_ref[pl.ds(bs, BC), :] * inv_c
            mx = max_ref[pl.ds(bs, BC), :]

            # Column-shifted + column-masked copies: 2*(K-1) rolls total,
            # shared by every filter row ky (exact because the col mask is
            # row-invariant wherever the row mask is nonzero).
            cols = []
            for feat in (avg, mx):
                per = []
                for kx in range(K):
                    dx = kx - P
                    if dx == 0:
                        per.append(feat)
                    else:
                        per.append(lane_roll(feat, -dx) * mask_ref[K + kx])
                cols.append(per)

            acc0 = jnp.zeros((BC, HW_p), jnp.float32)
            acc1 = jnp.zeros((BC, HW_p), jnp.float32)
            for ky in range(K):
                dy = ky - P
                # two independent FMA chains (avg channel / max channel)
                inner_a = cols[0][0] * w_ref[ky * K]
                inner_m = cols[1][0] * w_ref[K * K + ky * K]
                for kx in range(1, K):
                    inner_a = inner_a + cols[0][kx] * w_ref[ky * K + kx]
                    inner_m = inner_m + cols[1][kx] * w_ref[K * K + ky * K + kx]
                contrib = lane_roll(inner_a + inner_m, -dy * W)
                if dy != 0:
                    contrib = contrib * mask_ref[ky]
                if ky % 2 == 0:
                    acc0 = acc0 + contrib
                else:
                    acc1 = acc1 + contrib
            o_ref[pl.ds(bs, BC), :] = jax.nn.sigmoid(acc0 + acc1).astype(o_ref.dtype)

        if n_bchunks == 1:
            conv_chunk(0)
        else:
            def body(i, carry):
                conv_chunk(pl.multiple_of(i * BC, BC))
                return carry
            lax.fori_loop(0, n_bchunks, body, 0, unroll=(n_bchunks <= 4))


def spatial_attention(x, weight, kernel_size=7):
    """x: (N, C, H, W); weight: (1, 2, K, K) -> (N, 1, H, W), float32."""
    assert kernel_size in (3, 7), "kernel size must be 3 or 7"
    N, C, H, W = x.shape
    K = kernel_size
    P = 3 if K == 7 else 1
    HW = H * W
    HW_p = _round_up(HW, 128)                 # lane-dense, full-lane stores

    cap = _vmem_capacity_bytes()
    target = (24 << 20) if cap <= (64 << 20) else (48 << 20)

    B_blk, CC = _pick_blocks(N, C, HW_p, x.dtype.itemsize, target)
    N_pad = _round_up(N, B_blk)
    BC = 8 if B_blk % 8 == 0 else B_blk       # conv batch sub-chunk

    # lane-dense flattened spatial layout, zero-padded batch/lanes
    x_flat = x.reshape(N, C, HW)
    if HW_p != HW or N_pad != N:
        x_flat = jnp.pad(x_flat, ((0, N_pad - N), (0, 0), (0, HW_p - HW)))

    w_flat = weight.reshape(-1).astype(jnp.float32)         # (2*K*K,) taps

    # boundary masks (implicit zero padding + lane padding), built once
    lanes = jnp.arange(HW_p, dtype=jnp.int32)
    valid = lanes < HW
    h_idx = lanes // W
    w_idx = lanes % W
    rows, colsm = [], []
    for k in range(K):
        d = k - P
        rows.append(valid & (h_idx + d >= 0) & (h_idx + d < H))
        colsm.append(valid & (w_idx + d >= 0) & (w_idx + d < W))
    masks = jnp.stack(rows + colsm, axis=0).astype(jnp.float32)
    masks = masks.reshape(2 * K, 1, HW_p)     # rows 0..K-1: row masks, K..2K-1: col masks

    kernel = functools.partial(_spatial_attn_kernel,
                               C=C, W=W, K=K, P=P, HW_p=HW_p, BC=BC)

    # honest VMEM accounting: double-buffered input/output, scratch, masks,
    # and the conv temporaries of one batch sub-chunk
    footprint = (2 * B_blk * CC * HW_p * x.dtype.itemsize   # x block (x2 buf)
                 + 2 * B_blk * HW_p * 4                     # out block (x2 buf)
                 + 2 * B_blk * HW_p * 4                     # sum/max scratch
                 + 2 * (2 * K) * HW_p * 4                   # masks (x2 buf)
                 + 20 * BC * HW_p * 4)                      # conv temporaries
    vmem_limit = int(min(max(footprint * 3 // 2 + (4 << 20), 32 << 20),
                         int(cap * 0.9)))

    out_flat = pl.pallas_call(
        kernel,
        out_shape=jax.ShapeDtypeStruct((N_pad, HW_p), jnp.float32),
        grid_spec=pltpu.PrefetchScalarGridSpec(
            num_scalar_prefetch=0,
            grid=(N_pad // B_blk, C // CC),
            in_specs=[
                # filter taps live in SMEM (scalar reads inside the tap loops)
                pl.BlockSpec(memory_space=pltpu.MemorySpace.SMEM),
                # boundary-mask table, resident (constant block index)
                pl.BlockSpec((2 * K, 1, HW_p), lambda b, c: (0, 0, 0)),
                # B_blk batch rows x CC channels x lane-dense H*W
                pl.BlockSpec((B_blk, CC, HW_p), lambda b, c: (b, c, 0)),
            ],
            out_specs=pl.BlockSpec((B_blk, HW_p), lambda b, c: (b, 0)),
            scratch_shapes=[
                pltpu.VMEM((B_blk, HW_p), jnp.float32),     # running sum
                pltpu.VMEM((B_blk, HW_p), jnp.float32),     # running max
            ],
        ),
        compiler_params=pltpu.CompilerParams(
            dimension_semantics=("parallel", "arbitrary"),
            vmem_limit_bytes=vmem_limit,
        ),
    )(w_flat, masks, x_flat)

    return out_flat[:N, :HW].reshape(N, 1, H, W)


def _reference(x, weight, kernel_size=7):
    """Pure-JAX reference matching the PyTorch forward."""
    P = 3 if kernel_size == 7 else 1
    avg = jnp.mean(x, axis=1, keepdims=True)
    mx = jnp.max(x, axis=1, keepdims=True)
    feat = jnp.concatenate([avg, mx], axis=1)               # (N, 2, H, W)
    y = lax.conv_general_dilated(
        feat, weight,
        window_strides=(1, 1),
        padding=((P, P), (P, P)),
        dimension_numbers=("NCHW", "OIHW", "NCHW"),
    )
    return jax.nn.sigmoid(y)


if __name__ == "__main__":
    key = jax.random.PRNGKey(0)
    kx, kw = jax.random.split(key)

    N, C, H, W = 2, 4, 16, 16
    K = 7

    x = jax.random.normal(kx, (N, C, H, W), dtype=jnp.float32)
    # Conv2d(2, 1, 7, bias=False) weight -> (1, 2, 7, 7)
    fan_in = 2 * K * K
    bound = 1.0 / np.sqrt(fan_in)
    weight = jax.random.uniform(
        kw, (1, 2, K, K), minval=-bound, maxval=bound, dtype=jnp.float32
    )

    out = spatial_attention(x, weight, kernel_size=K)
    out = jax.block_until_ready(out)

    ref = _reference(x, weight, kernel_size=K)
    np.testing.assert_allclose(np.asarray(out), np.asarray(ref),
                               rtol=1e-5, atol=1e-5)

    print("KERNEL_OK")
</pallas_src>

<mosaic_0001>
module attributes {stable_mosaic.version = 11 : i64} {
  func.func @_spatial_attn_kernel(%arg0: i32, %arg1: i32, %arg2: memref<98xf32, #tpu.memory_space<smem>>, %arg3: memref<14x1x256xf32, #tpu.memory_space<vmem>>, %arg4: memref<2x4x256xf32, #tpu.memory_space<vmem>>, %arg5: memref<2x256xf32, #tpu.memory_space<vmem>>, %arg6: memref<2x256xf32, #tpu.memory_space<vmem>>, %arg7: memref<2x256xf32, #tpu.memory_space<vmem>>) attributes {dimension_semantics = [#tpu.dimension_semantics<parallel>, #tpu.dimension_semantics<arbitrary>], iteration_bounds = array<i64: 1, 1>, scalar_prefetch = 0 : i64, scratch_operands = 2 : i64, tpu.core_type = #tpu.core_type<tc>, window_params = [{transform_indices = @transform_0, window_bounds = array<i64: 98>}, {pipeline_mode = #tpu.pipeline_mode<synchronous>, transform_indices = @transform_1, window_bounds = array<i64: 14, 1, 256>}, {transform_indices = @transform_2, window_bounds = array<i64: 2, 4, 256>}, {transform_indices = @transform_3, window_bounds = array<i64: 2, 256>}]} {
    %c0_i32 = arith.constant 0 : i32
    %0 = arith.cmpi eq, %arg1, %c0_i32 : i32
    %1 = arith.extui %0 : i1 to i32
    %c0_i32_0 = arith.constant 0 : i32
    %2 = arith.cmpi ne, %1, %c0_i32_0 : i32
    scf.if %2 {
      %cst_14 = arith.constant 0.000000e+00 : f32
      %15 = vector.broadcast %cst_14 : f32 to vector<2x256xf32>
      %c0_15 = arith.constant 0 : index
      %c0_16 = arith.constant 0 : index
      %16 = vector.load %arg6[%c0_15, %c0_16] : memref<2x256xf32, #tpu.memory_space<vmem>>, vector<2x256xf32>
      tpu.vector_store %arg6[%c0_15, %c0_16], %15 {strides = array<i32>} : memref<2x256xf32, #tpu.memory_space<vmem>>, vector<2x256xf32>,
      %cst_17 = arith.constant 0xFF800000 : f32
      %17 = vector.broadcast %cst_17 : f32 to vector<2x256xf32>
      %c0_18 = arith.constant 0 : index
      %c0_19 = arith.constant 0 : index
      %18 = vector.load %arg7[%c0_18, %c0_19] : memref<2x256xf32, #tpu.memory_space<vmem>>, vector<2x256xf32>
      tpu.vector_store %arg7[%c0_18, %c0_19], %17 {strides = array<i32>} : memref<2x256xf32, #tpu.memory_space<vmem>>, vector<2x256xf32>,
    } else {
    }
    %c0 = arith.constant 0 : index
    %c0_1 = arith.constant 0 : index
    %c0_2 = arith.constant 0 : index
    %3 = vector.load %arg4[%c0, %c0_1, %c0_2] : memref<2x4x256xf32, #tpu.memory_space<vmem>>, vector<2x4x256xf32>
    %c0_3 = arith.constant 0 : index
    %c0_4 = arith.constant 0 : index
    %4 = vector.load %arg6[%c0_3, %c0_4] : memref<2x256xf32, #tpu.memory_space<vmem>>, vector<2x256xf32>
    %cst = arith.constant dense<0.000000e+00> : vector<2x256xf32>
    %5 = vector.multi_reduction <add>, %3, %cst [1] : vector<2x4x256xf32> to vector<2x256xf32>
    %6 = arith.addf %4, %5 : vector<2x256xf32>
    %c0_5 = arith.constant 0 : index
    %c0_6 = arith.constant 0 : index
    %7 = vector.load %arg6[%c0_5, %c0_6] : memref<2x256xf32, #tpu.memory_space<vmem>>, vector<2x256xf32>
    tpu.vector_store %arg6[%c0_5, %c0_6], %6 {strides = array<i32>} : memref<2x256xf32, #tpu.memory_space<vmem>>, vector<2x256xf32>,
    %c0_7 = arith.constant 0 : index
    %c0_8 = arith.constant 0 : index
    %8 = vector.load %arg7[%c0_7, %c0_8] : memref<2x256xf32, #tpu.memory_space<vmem>>, vector<2x256xf32>
    %cst_9 = arith.constant dense<0xFF800000> : vector<2x256xf32>
    %9 = vector.multi_reduction <maximumf>, %3, %cst_9 [1] : vector<2x4x256xf32> to vector<2x256xf32>
    %10 = arith.maximumf %8, %9 : vector<2x256xf32>
    %c0_10 = arith.constant 0 : index
    %c0_11 = arith.constant 0 : index
    %11 = vector.load %arg7[%c0_10, %c0_11] : memref<2x256xf32, #tpu.memory_space<vmem>>, vector<2x256xf32>
    tpu.vector_store %arg7[%c0_10, %c0_11], %10 {strides = array<i32>} : memref<2x256xf32, #tpu.memory_space<vmem>>, vector<2x256xf32>,
    %c0_i32_12 = arith.constant 0 : i32
    %12 = arith.cmpi eq, %arg1, %c0_i32_12 : i32
    %13 = arith.extui %12 : i1 to i32
    %c0_i32_13 = arith.constant 0 : i32
    %14 = arith.cmpi ne, %13, %c0_i32_13 : i32
    scf.if %14 {
      %c0_14 = arith.constant 0 : index
      %c0_15 = arith.constant 0 : index
      %15 = vector.load %arg6[%c0_14, %c0_15] : memref<2x256xf32, #tpu.memory_space<vmem>>, vector<2x256xf32>
      %cst_16 = arith.constant 2.500000e-01 : f32
      %16 = vector.broadcast %cst_16 : f32 to vector<2x256xf32>
      %17 = arith.mulf %15, %16 : vector<2x256xf32>
      %c0_17 = arith.constant 0 : index
      %c0_18 = arith.constant 0 : index
      %18 = vector.load %arg7[%c0_17, %c0_18] : memref<2x256xf32, #tpu.memory_space<vmem>>, vector<2x256xf32>
      %c3_i32 = arith.constant 3 : i32
      %19 = tpu.dynamic_rotate %17 by %c3_i32 dim 1 : vector<2x256xf32>, i32 -> vector<2x256xf32>
      %c7 = arith.constant 7 : index
      %c0_19 = arith.constant 0 : index
      %c0_20 = arith.constant 0 : index
      %20 = vector.load %arg3[%c7, %c0_19, %c0_20] : memref<14x1x256xf32, #tpu.memory_space<vmem>>, vector<1x1x256xf32>
      %21 = vector.shape_cast %20 : vector<1x1x256xf32> to vector<1x256xf32>
      %22 = vector.broadcast %21 : vector<1x256xf32> to vector<2x256xf32>
      %23 = arith.mulf %19, %22 : vector<2x256xf32>
      %c2_i32 = arith.constant 2 : i32
      %24 = tpu.dynamic_rotate %17 by %c2_i32 dim 1 : vector<2x256xf32>, i32 -> vector<2x256xf32>
      %c8 = arith.constant 8 : index
      %c0_21 = arith.constant 0 : index
      %c0_22 = arith.constant 0 : index
      %25 = vector.load %arg3[%c8, %c0_21, %c0_22] : memref<14x1x256xf32, #tpu.memory_space<vmem>>, vector<1x1x256xf32>
      %26 = vector.shape_cast %25 : vector<1x1x256xf32> to vector<1x256xf32>
      %27 = vector.broadcast %26 : vector<1x256xf32> to vector<2x256xf32>
      %28 = arith.mulf %24, %27 : vector<2x256xf32>
      %c1_i32 = arith.constant 1 : i32
      %29 = tpu.dynamic_rotate %17 by %c1_i32 dim 1 : vector<2x256xf32>, i32 -> vector<2x256xf32>
      %c9 = arith.constant 9 : index
      %c0_23 = arith.constant 0 : index
      %c0_24 = arith.constant 0 : index
      %30 = vector.load %arg3[%c9, %c0_23, %c0_24] : memref<14x1x256xf32, #tpu.memory_space<vmem>>, vector<1x1x256xf32>
      %31 = vector.shape_cast %30 : vector<1x1x256xf32> to vector<1x256xf32>
      %32 = vector.broadcast %31 : vector<1x256xf32> to vector<2x256xf32>
      %33 = arith.mulf %29, %32 : vector<2x256xf32>
      %c255_i32 = arith.constant 255 : i32
      %34 = tpu.dynamic_rotate %17 by %c255_i32 dim 1 : vector<2x256xf32>, i32 -> vector<2x256xf32>
      %c11 = arith.constant 11 : index
      %c0_25 = arith.constant 0 : index
      %c0_26 = arith.constant 0 : index
      %35 = vector.load %arg3[%c11, %c0_25, %c0_26] : memref<14x1x256xf32, #tpu.memory_space<vmem>>, vector<1x1x256xf32>
      %36 = vector.shape_cast %35 : vector<1x1x256xf32> to vector<1x256xf32>
      %37 = vector.broadcast %36 : vector<1x256xf32> to vector<2x256xf32>
      %38 = arith.mulf %34, %37 : vector<2x256xf32>
      %c254_i32 = arith.constant 254 : i32
      %39 = tpu.dynamic_rotate %17 by %c254_i32 dim 1 : vector<2x256xf32>, i32 -> vector<2x256xf32>
      %c12 = arith.constant 12 : index
      %c0_27 = arith.constant 0 : index
      %c0_28 = arith.constant 0 : index
      %40 = vector.load %arg3[%c12, %c0_27, %c0_28] : memref<14x1x256xf32, #tpu.memory_space<vmem>>, vector<1x1x256xf32>
      %41 = vector.shape_cast %40 : vector<1x1x256xf32> to vector<1x256xf32>
      %42 = vector.broadcast %41 : vector<1x256xf32> to vector<2x256xf32>
      %43 = arith.mulf %39, %42 : vector<2x256xf32>
      %c253_i32 = arith.constant 253 : i32
      %44 = tpu.dynamic_rotate %17 by %c253_i32 dim 1 : vector<2x256xf32>, i32 -> vector<2x256xf32>
      %c13 = arith.constant 13 : index
      %c0_29 = arith.constant 0 : index
      %c0_30 = arith.constant 0 : index
      %45 = vector.load %arg3[%c13, %c0_29, %c0_30] : memref<14x1x256xf32, #tpu.memory_space<vmem>>, vector<1x1x256xf32>
      %46 = vector.shape_cast %45 : vector<1x1x256xf32> to vector<1x256xf32>
      %47 = vector.broadcast %46 : vector<1x256xf32> to vector<2x256xf32>
      %48 = arith.mulf %44, %47 : vector<2x256xf32>
      %c3_i32_31 = arith.constant 3 : i32
      %49 = tpu.dynamic_rotate %18 by %c3_i32_31 dim 1 : vector<2x256xf32>, i32 -> vector<2x256xf32>
      %c7_32 = arith.constant 7 : index
      %c0_33 = arith.constant 0 : index
      %c0_34 = arith.constant 0 : index
      %50 = vector.load %arg3[%c7_32, %c0_33, %c0_34] : memref<14x1x256xf32, #tpu.memory_space<vmem>>, vector<1x1x256xf32>
      %51 = vector.shape_cast %50 : vector<1x1x256xf32> to vector<1x256xf32>
      %52 = vector.broadcast %51 : vector<1x256xf32> to vector<2x256xf32>
      %53 = arith.mulf %49, %52 : vector<2x256xf32>
      %c2_i32_35 = arith.constant 2 : i32
      %54 = tpu.dynamic_rotate %18 by %c2_i32_35 dim 1 : vector<2x256xf32>, i32 -> vector<2x256xf32>
      %c8_36 = arith.constant 8 : index
      %c0_37 = arith.constant 0 : index
      %c0_38 = arith.constant 0 : index
      %55 = vector.load %arg3[%c8_36, %c0_37, %c0_38] : memref<14x1x256xf32, #tpu.memory_space<vmem>>, vector<1x1x256xf32>
      %56 = vector.shape_cast %55 : vector<1x1x256xf32> to vector<1x256xf32>
      %57 = vector.broadcast %56 : vector<1x256xf32> to vector<2x256xf32>
      %58 = arith.mulf %54, %57 : vector<2x256xf32>
      %c1_i32_39 = arith.constant 1 : i32
      %59 = tpu.dynamic_rotate %18 by %c1_i32_39 dim 1 : vector<2x256xf32>, i32 -> vector<2x256xf32>
      %c9_40 = arith.constant 9 : index
      %c0_41 = arith.constant 0 : index
      %c0_42 = arith.constant 0 : index
      %60 = vector.load %arg3[%c9_40, %c0_41, %c0_42] : memref<14x1x256xf32, #tpu.memory_space<vmem>>, vector<1x1x256xf32>
      %61 = vector.shape_cast %60 : vector<1x1x256xf32> to vector<1x256xf32>
      %62 = vector.broadcast %61 : vector<1x256xf32> to vector<2x256xf32>
      %63 = arith.mulf %59, %62 : vector<2x256xf32>
      %c255_i32_43 = arith.constant 255 : i32
      %64 = tpu.dynamic_rotate %18 by %c255_i32_43 dim 1 : vector<2x256xf32>, i32 -> vector<2x256xf32>
      %c11_44 = arith.constant 11 : index
      %c0_45 = arith.constant 0 : index
      %c0_46 = arith.constant 0 : index
      %65 = vector.load %arg3[%c11_44, %c0_45, %c0_46] : memref<14x1x256xf32, #tpu.memory_space<vmem>>, vector<1x1x256xf32>
      %66 = vector.shape_cast %65 : vector<1x1x256xf32> to vector<1x256xf32>
      %67 = vector.broadcast %66 : vector<1x256xf32> to vector<2x256xf32>
      %68 = arith.mulf %64, %67 : vector<2x256xf32>
      %c254_i32_47 = arith.constant 254 : i32
      %69 = tpu.dynamic_rotate %18 by %c254_i32_47 dim 1 : vector<2x256xf32>, i32 -> vector<2x256xf32>
      %c12_48 = arith.constant 12 : index
      %c0_49 = arith.constant 0 : index
      %c0_50 = arith.constant 0 : index
      %70 = vector.load %arg3[%c12_48, %c0_49, %c0_50] : memref<14x1x256xf32, #tpu.memory_space<vmem>>, vector<1x1x256xf32>
      %71 = vector.shape_cast %70 : vector<1x1x256xf32> to vector<1x256xf32>
      %72 = vector.broadcast %71 : vector<1x256xf32> to vector<2x256xf32>
      %73 = arith.mulf %69, %72 : vector<2x256xf32>
      %c253_i32_51 = arith.constant 253 : i32
      %74 = tpu.dynamic_rotate %18 by %c253_i32_51 dim 1 : vector<2x256xf32>, i32 -> vector<2x256xf32>
      %c13_52 = arith.constant 13 : index
      %c0_53 = arith.constant 0 : index
      %c0_54 = arith.constant 0 : index
      %75 = vector.load %arg3[%c13_52, %c0_53, %c0_54] : memref<14x1x256xf32, #tpu.memory_space<vmem>>, vector<1x1x256xf32>
      %76 = vector.shape_cast %75 : vector<1x1x256xf32> to vector<1x256xf32>
      %77 = vector.broadcast %76 : vector<1x256xf32> to vector<2x256xf32>
      %78 = arith.mulf %74, %77 : vector<2x256xf32>
      %cst_55 = arith.constant 0.000000e+00 : f32
      %79 = vector.broadcast %cst_55 : f32 to vector<2x256xf32>
      %cst_56 = arith.constant 0.000000e+00 : f32
      %80 = vector.broadcast %cst_56 : f32 to vector<2x256xf32>
      %c0_57 = arith.constant 0 : index
      %81 = memref.load %arg2[%c0_57] : memref<98xf32, #tpu.memory_space<smem>>
      %82 = vector.broadcast %81 : f32 to vector<2x256xf32>
      %83 = arith.mulf %23, %82 : vector<2x256xf32>
      %c49 = arith.constant 49 : index
      %84 = memref.load %arg2[%c49] : memref<98xf32, #tpu.memory_space<smem>>
      %85 = vector.broadcast %84 : f32 to vector<2x256xf32>
      %86 = arith.mulf %53, %85 : vector<2x256xf32>
      %c1 = arith.constant 1 : index
      %87 = memref.load %arg2[%c1] : memref<98xf32, #tpu.memory_space<smem>>
      %88 = vector.broadcast %87 : f32 to vector<2x256xf32>
      %89 = arith.mulf %28, %88 : vector<2x256xf32>
      %90 = arith.addf %83, %89 : vector<2x256xf32>
      %c50 = arith.constant 50 : index
      %91 = memref.load %arg2[%c50] : memref<98xf32, #tpu.memory_space<smem>>
      %92 = vector.broadcast %91 : f32 to vector<2x256xf32>
      %93 = arith.mulf %58, %92 : vector<2x256xf32>
      %94 = arith.addf %86, %93 : vector<2x256xf32>
      %c2 = arith.constant 2 : index
      %95 = memref.load %arg2[%c2] : memref<98xf32, #tpu.memory_space<smem>>
      %96 = vector.broadcast %95 : f32 to vector<2x256xf32>
      %97 = arith.mulf %33, %96 : vector<2x256xf32>
      %98 = arith.addf %90, %97 : vector<2x256xf32>
      %c51 = arith.constant 51 : index
      %99 = memref.load %arg2[%c51] : memref<98xf32, #tpu.memory_space<smem>>
      %100 = vector.broadcast %99 : f32 to vector<2x256xf32>
      %101 = arith.mulf %63, %100 : vector<2x256xf32>
      %102 = arith.addf %94, %101 : vector<2x256xf32>
      %c3 = arith.constant 3 : index
      %103 = memref.load %arg2[%c3] : memref<98xf32, #tpu.memory_space<smem>>
      %104 = vector.broadcast %103 : f32 to vector<2x256xf32>
      %105 = arith.mulf %17, %104 : vector<2x256xf32>
      %106 = arith.addf %98, %105 : vector<2x256xf32>
      %c52 = arith.constant 52 : index
      %107 = memref.load %arg2[%c52] : memref<98xf32, #tpu.memory_space<smem>>
      %108 = vector.broadcast %107 : f32 to vector<2x256xf32>
      %109 = arith.mulf %18, %108 : vector<2x256xf32>
      %110 = arith.addf %102, %109 : vector<2x256xf32>
      %c4 = arith.constant 4 : index
      %111 = memref.load %arg2[%c4] : memref<98xf32, #tpu.memory_space<smem>>
      %112 = vector.broadcast %111 : f32 to vector<2x256xf32>
      %113 = arith.mulf %38, %112 : vector<2x256xf32>
      %114 = arith.addf %106, %113 : vector<2x256xf32>
      %c53 = arith.constant 53 : index
      %115 = memref.load %arg2[%c53] : memref<98xf32, #tpu.memory_space<smem>>
      %116 = vector.broadcast %115 : f32 to vector<2x256xf32>
      %117 = arith.mulf %68, %116 : vector<2x256xf32>
      %118 = arith.addf %110, %117 : vector<2x256xf32>
      %c5 = arith.constant 5 : index
      %119 = memref.load %arg2[%c5] : memref<98xf32, #tpu.memory_space<smem>>
      %120 = vector.broadcast %119 : f32 to vector<2x256xf32>
      %121 = arith.mulf %43, %120 : vector<2x256xf32>
      %122 = arith.addf %114, %121 : vector<2x256xf32>
      %c54 = arith.constant 54 : index
      %123 = memref.load %arg2[%c54] : memref<98xf32, #tpu.memory_space<smem>>
      %124 = vector.broadcast %123 : f32 to vector<2x256xf32>
      %125 = arith.mulf %73, %124 : vector<2x256xf32>
      %126 = arith.addf %118, %125 : vector<2x256xf32>
      %c6 = arith.constant 6 : index
      %127 = memref.load %arg2[%c6] : memref<98xf32, #tpu.memory_space<smem>>
      %128 = vector.broadcast %127 : f32 to vector<2x256xf32>
      %129 = arith.mulf %48, %128 : vector<2x256xf32>
      %130 = arith.addf %122, %129 : vector<2x256xf32>
      %c55 = arith.constant 55 : index
      %131 = memref.load %arg2[%c55] : memref<98xf32, #tpu.memory_space<smem>>
      %132 = vector.broadcast %131 : f32 to vector<2x256xf32>
      %133 = arith.mulf %78, %132 : vector<2x256xf32>
      %134 = arith.addf %126, %133 : vector<2x256xf32>
      %135 = arith.addf %130, %134 : vector<2x256xf32>
      %c48_i32 = arith.constant 48 : i32
      %136 = tpu.dynamic_rotate %135 by %c48_i32 dim 1 : vector<2x256xf32>, i32 -> vector<2x256xf32>
      %c0_58 = arith.constant 0 : index
      %c0_59 = arith.constant 0 : index
      %c0_60 = arith.constant 0 : index
      %137 = vector.load %arg3[%c0_58, %c0_59, %c0_60] : memref<14x1x256xf32, #tpu.memory_space<vmem>>, vector<1x1x256xf32>
      %138 = vector.shape_cast %137 : vector<1x1x256xf32> to vector<1x256xf32>
      %139 = vector.broadcast %138 : vector<1x256xf32> to vector<2x256xf32>
      %140 = arith.mulf %136, %139 : vector<2x256xf32>
      %141 = arith.addf %79, %140 : vector<2x256xf32>
      %c7_61 = arith.constant 7 : index
      %142 = memref.load %arg2[%c7_61] : memref<98xf32, #tpu.memory_space<smem>>
      %143 = vector.broadcast %142 : f32 to vector<2x256xf32>
      %144 = arith.mulf %23, %143 : vector<2x256xf32>
      %c56 = arith.constant 56 : index
      %145 = memref.load %arg2[%c56] : memref<98xf32, #tpu.memory_space<smem>>
      %146 = vector.broadcast %145 : f32 to vector<2x256xf32>
      %147 = arith.mulf %53, %146 : vector<2x256xf32>
      %c8_62 = arith.constant 8 : index
      %148 = memref.load %arg2[%c8_62] : memref<98xf32, #tpu.memory_space<smem>>
      %149 = vector.broadcast %148 : f32 to vector<2x256xf32>
      %150 = arith.mulf %28, %149 : vector<2x256xf32>
      %151 = arith.addf %144, %150 : vector<2x256xf32>
      %c57 = arith.constant 57 : index
      %152 = memref.load %arg2[%c57] : memref<98xf32, #tpu.memory_space<smem>>
      %153 = vector.broadcast %152 : f32 to vector<2x256xf32>
      %154 = arith.mulf %58, %153 : vector<2x256xf32>
      %155 = arith.addf %147, %154 : vector<2x256xf32>
      %c9_63 = arith.constant 9 : index
      %156 = memref.load %arg2[%c9_63] : memref<98xf32, #tpu.memory_space<smem>>
      %157 = vector.broadcast %156 : f32 to vector<2x256xf32>
      %158 = arith.mulf %33, %157 : vector<2x256xf32>
      %159 = arith.addf %151, %158 : vector<2x256xf32>
      %c58 = arith.constant 58 : index
      %160 = memref.load %arg2[%c58] : memref<98xf32, #tpu.memory_space<smem>>
      %161 = vector.broadcast %160 : f32 to vector<2x256xf32>
      %162 = arith.mulf %63, %161 : vector<2x256xf32>
      %163 = arith.addf %155, %162 : vector<2x256xf32>
      %c10 = arith.constant 10 : index
      %164 = memref.load %arg2[%c10] : memref<98xf32, #tpu.memory_space<smem>>
      %165 = vector.broadcast %164 : f32 to vector<2x256xf32>
      %166 = arith.mulf %17, %165 : vector<2x256xf32>
      %167 = arith.addf %159, %166 : vector<2x256xf32>
      %c59 = arith.constant 59 : index
      %168 = memref.load %arg2[%c59] : memref<98xf32, #tpu.memory_space<smem>>
      %169 = vector.broadcast %168 : f32 to vector<2x256xf32>
      %170 = arith.mulf %18, %169 : vector<2x256xf32>
      %171 = arith.addf %163, %170 : vector<2x256xf32>
      %c11_64 = arith.constant 11 : index
      %172 = memref.load %arg2[%c11_64] : memref<98xf32, #tpu.memory_space<smem>>
      %173 = vector.broadcast %172 : f32 to vector<2x256xf32>
      %174 = arith.mulf %38, %173 : vector<2x256xf32>
      %175 = arith.addf %167, %174 : vector<2x256xf32>
      %c60 = arith.constant 60 : index
      %176 = memref.load %arg2[%c60] : memref<98xf32, #tpu.memory_space<smem>>
      %177 = vector.broadcast %176 : f32 to vector<2x256xf32>
      %178 = arith.mulf %68, %177 : vector<2x256xf32>
      %179 = arith.addf %171, %178 : vector<2x256xf32>
      %c12_65 = arith.constant 12 : index
      %180 = memref.load %arg2[%c12_65] : memref<98xf32, #tpu.memory_space<smem>>
      %181 = vector.broadcast %180 : f32 to vector<2x256xf32>
      %182 = arith.mulf %43, %181 : vector<2x256xf32>
      %183 = arith.addf %175, %182 : vector<2x256xf32>
      %c61 = arith.constant 61 : index
      %184 = memref.load %arg2[%c61] : memref<98xf32, #tpu.memory_space<smem>>
      %185 = vector.broadcast %184 : f32 to vector<2x256xf32>
      %186 = arith.mulf %73, %185 : vector<2x256xf32>
      %187 = arith.addf %179, %186 : vector<2x256xf32>
      %c13_66 = arith.constant 13 : index
      %188 = memref.load %arg2[%c13_66] : memref<98xf32, #tpu.memory_space<smem>>
      %189 = vector.broadcast %188 : f32 to vector<2x256xf32>
      %190 = arith.mulf %48, %189 : vector<2x256xf32>
      %191 = arith.addf %183, %190 : vector<2x256xf32>
      %c62 = arith.constant 62 : index
      %192 = memref.load %arg2[%c62] : memref<98xf32, #tpu.memory_space<smem>>
      %193 = vector.broadcast %192 : f32 to vector<2x256xf32>
      %194 = arith.mulf %78, %193 : vector<2x256xf32>
      %195 = arith.addf %187, %194 : vector<2x256xf32>
      %196 = arith.addf %191, %195 : vector<2x256xf32>
      %c32_i32 = arith.constant 32 : i32
      %197 = tpu.dynamic_rotate %196 by %c32_i32 dim 1 : vector<2x256xf32>, i32 -> vector<2x256xf32>
      %c1_67 = arith.constant 1 : index
      %c0_68 = arith.constant 0 : index
      %c0_69 = arith.constant 0 : index
      %198 = vector.load %arg3[%c1_67, %c0_68, %c0_69] : memref<14x1x256xf32, #tpu.memory_space<vmem>>, vector<1x1x256xf32>
      %199 = vector.shape_cast %198 : vector<1x1x256xf32> to vector<1x256xf32>
      %200 = vector.broadcast %199 : vector<1x256xf32> to vector<2x256xf32>
      %201 = arith.mulf %197, %200 : vector<2x256xf32>
      %202 = arith.addf %80, %201 : vector<2x256xf32>
      %c14 = arith.constant 14 : index
      %203 = memref.load %arg2[%c14] : memref<98xf32, #tpu.memory_space<smem>>
      %204 = vector.broadcast %203 : f32 to vector<2x256xf32>
      %205 = arith.mulf %23, %204 : vector<2x256xf32>
      %c63 = arith.constant 63 : index
      %206 = memref.load %arg2[%c63] : memref<98xf32, #tpu.memory_space<smem>>
      %207 = vector.broadcast %206 : f32 to vector<2x256xf32>
      %208 = arith.mulf %53, %207 : vector<2x256xf32>
      %c15 = arith.constant 15 : index
      %209 = memref.load %arg2[%c15] : memref<98xf32, #tpu.memory_space<smem>>
      %210 = vector.broadcast %209 : f32 to vector<2x256xf32>
      %211 = arith.mulf %28, %210 : vector<2x256xf32>
      %212 = arith.addf %205, %211 : vector<2x256xf32>
      %c64 = arith.constant 64 : index
      %213 = memref.load %arg2[%c64] : memref<98xf32, #tpu.memory_space<smem>>
      %214 = vector.broadcast %213 : f32 to vector<2x256xf32>
      %215 = arith.mulf %58, %214 : vector<2x256xf32>
      %216 = arith.addf %208, %215 : vector<2x256xf32>
      %c16 = arith.constant 16 : index
      %217 = memref.load %arg2[%c16] : memref<98xf32, #tpu.memory_space<smem>>
      %218 = vector.broadcast %217 : f32 to vector<2x256xf32>
      %219 = arith.mulf %33, %218 : vector<2x256xf32>
      %220 = arith.addf %212, %219 : vector<2x256xf32>
      %c65 = arith.constant 65 : index
      %221 = memref.load %arg2[%c65] : memref<98xf32, #tpu.memory_space<smem>>
      %222 = vector.broadcast %221 : f32 to vector<2x256xf32>
      %223 = arith.mulf %63, %222 : vector<2x256xf32>
      %224 = arith.addf %216, %223 : vector<2x256xf32>
      %c17 = arith.constant 17 : index
      %225 = memref.load %arg2[%c17] : memref<98xf32, #tpu.memory_space<smem>>
      %226 = vector.broadcast %225 : f32 to vector<2x256xf32>
      %227 = arith.mulf %17, %226 : vector<2x256xf32>
      %228 = arith.addf %220, %227 : vector<2x256xf32>
      %c66 = arith.constant 66 : index
      %229 = memref.load %arg2[%c66] : memref<98xf32, #tpu.memory_space<smem>>
      %230 = vector.broadcast %229 : f32 to vector<2x256xf32>
      %231 = arith.mulf %18, %230 : vector<2x256xf32>
      %232 = arith.addf %224, %231 : vector<2x256xf32>
      %c18 = arith.constant 18 : index
      %233 = memref.load %arg2[%c18] : memref<98xf32, #tpu.memory_space<smem>>
      %234 = vector.broadcast %233 : f32 to vector<2x256xf32>
      %235 = arith.mulf %38, %234 : vector<2x256xf32>
      %236 = arith.addf %228, %235 : vector<2x256xf32>
      %c67 = arith.constant 67 : index
      %237 = memref.load %arg2[%c67] : memref<98xf32, #tpu.memory_space<smem>>
      %238 = vector.broadcast %237 : f32 to vector<2x256xf32>
      %239 = arith.mulf %68, %238 : vector<2x256xf32>
      %240 = arith.addf %232, %239 : vector<2x256xf32>
      %c19 = arith.constant 19 : index
      %241 = memref.load %arg2[%c19] : memref<98xf32, #tpu.memory_space<smem>>
      %242 = vector.broadcast %241 : f32 to vector<2x256xf32>
      %243 = arith.mulf %43, %242 : vector<2x256xf32>
      %244 = arith.addf %236, %243 : vector<2x256xf32>
      %c68 = arith.constant 68 : index
      %245 = memref.load %arg2[%c68] : memref<98xf32, #tpu.memory_space<smem>>
      %246 = vector.broadcast %245 : f32 to vector<2x256xf32>
      %247 = arith.mulf %73, %246 : vector<2x256xf32>
      %248 = arith.addf %240, %247 : vector<2x256xf32>
      %c20 = arith.constant 20 : index
      %249 = memref.load %arg2[%c20] : memref<98xf32, #tpu.memory_space<smem>>
      %250 = vector.broadcast %249 : f32 to vector<2x256xf32>
      %251 = arith.mulf %48, %250 : vector<2x256xf32>
      %252 = arith.addf %244, %251 : vector<2x256xf32>
      %c69 = arith.constant 69 : index
      %253 = memref.load %arg2[%c69] : memref<98xf32, #tpu.memory_space<smem>>
      %254 = vector.broadcast %253 : f32 to vector<2x256xf32>
      %255 = arith.mulf %78, %254 : vector<2x256xf32>
      %256 = arith.addf %248, %255 : vector<2x256xf32>
      %257 = arith.addf %252, %256 : vector<2x256xf32>
      %c16_i32 = arith.constant 16 : i32
      %258 = tpu.dynamic_rotate %257 by %c16_i32 dim 1 : vector<2x256xf32>, i32 -> vector<2x256xf32>
      %c2_70 = arith.constant 2 : index
      %c0_71 = arith.constant 0 : index
      %c0_72 = arith.constant 0 : index
      %259 = vector.load %arg3[%c2_70, %c0_71, %c0_72] : memref<14x1x256xf32, #tpu.memory_space<vmem>>, vector<1x1x256xf32>
      %260 = vector.shape_cast %259 : vector<1x1x256xf32> to vector<1x256xf32>
      %261 = vector.broadcast %260 : vector<1x256xf32> to vector<2x256xf32>
      %262 = arith.mulf %258, %261 : vector<2x256xf32>
      %263 = arith.addf %141, %262 : vector<2x256xf32>
      %c21 = arith.constant 21 : index
      %264 = memref.load %arg2[%c21] : memref<98xf32, #tpu.memory_space<smem>>
      %265 = vector.broadcast %264 : f32 to vector<2x256xf32>
      %266 = arith.mulf %23, %265 : vector<2x256xf32>
      %c70 = arith.constant 70 : index
      %267 = memref.load %arg2[%c70] : memref<98xf32, #tpu.memory_space<smem>>
      %268 = vector.broadcast %267 : f32 to vector<2x256xf32>
      %269 = arith.mulf %53, %268 : vector<2x256xf32>
      %c22 = arith.constant 22 : index
      %270 = memref.load %arg2[%c22] : memref<98xf32, #tpu.memory_space<smem>>
      %271 = vector.broadcast %270 : f32 to vector<2x256xf32>
      %272 = arith.mulf %28, %271 : vector<2x256xf32>
      %273 = arith.addf %266, %272 : vector<2x256xf32>
      %c71 = arith.constant 71 : index
      %274 = memref.load %arg2[%c71] : memref<98xf32, #tpu.memory_space<smem>>
      %275 = vector.broadcast %274 : f32 to vector<2x256xf32>
      %276 = arith.mulf %58, %275 : vector<2x256xf32>
      %277 = arith.addf %269, %276 : vector<2x256xf32>
      %c23 = arith.constant 23 : index
      %278 = memref.load %arg2[%c23] : memref<98xf32, #tpu.memory_space<smem>>
      %279 = vector.broadcast %278 : f32 to vector<2x256xf32>
      %280 = arith.mulf %33, %279 : vector<2x256xf32>
      %281 = arith.addf %273, %280 : vector<2x256xf32>
      %c72 = arith.constant 72 : index
      %282 = memref.load %arg2[%c72] : memref<98xf32, #tpu.memory_space<smem>>
      %283 = vector.broadcast %282 : f32 to vector<2x256xf32>
      %284 = arith.mulf %63, %283 : vector<2x256xf32>
      %285 = arith.addf %277, %284 : vector<2x256xf32>
      %c24 = arith.constant 24 : index
      %286 = memref.load %arg2[%c24] : memref<98xf32, #tpu.memory_space<smem>>
      %287 = vector.broadcast %286 : f32 to vector<2x256xf32>
      %288 = arith.mulf %17, %287 : vector<2x256xf32>
      %289 = arith.addf %281, %288 : vector<2x256xf32>
      %c73 = arith.constant 73 : index
      %290 = memref.load %arg2[%c73] : memref<98xf32, #tpu.memory_space<smem>>
      %291 = vector.broadcast %290 : f32 to vector<2x256xf32>
      %292 = arith.mulf %18, %291 : vector<2x256xf32>
      %293 = arith.addf %285, %292 : vector<2x256xf32>
      %c25 = arith.constant 25 : index
      %294 = memref.load %arg2[%c25] : memref<98xf32, #tpu.memory_space<smem>>
      %295 = vector.broadcast %294 : f32 to vector<2x256xf32>
      %296 = arith.mulf %38, %295 : vector<2x256xf32>
      %297 = arith.addf %289, %296 : vector<2x256xf32>
      %c74 = arith.constant 74 : index
      %298 = memref.load %arg2[%c74] : memref<98xf32, #tpu.memory_space<smem>>
      %299 = vector.broadcast %298 : f32 to vector<2x256xf32>
      %300 = arith.mulf %68, %299 : vector<2x256xf32>
      %301 = arith.addf %293, %300 : vector<2x256xf32>
      %c26 = arith.constant 26 : index
      %302 = memref.load %arg2[%c26] : memref<98xf32, #tpu.memory_space<smem>>
      %303 = vector.broadcast %302 : f32 to vector<2x256xf32>
      %304 = arith.mulf %43, %303 : vector<2x256xf32>
      %305 = arith.addf %297, %304 : vector<2x256xf32>
      %c75 = arith.constant 75 : index
      %306 = memref.load %arg2[%c75] : memref<98xf32, #tpu.memory_space<smem>>
      %307 = vector.broadcast %306 : f32 to vector<2x256xf32>
      %308 = arith.mulf %73, %307 : vector<2x256xf32>
      %309 = arith.addf %301, %308 : vector<2x256xf32>
      %c27 = arith.constant 27 : index
      %310 = memref.load %arg2[%c27] : memref<98xf32, #tpu.memory_space<smem>>
      %311 = vector.broadcast %310 : f32 to vector<2x256xf32>
      %312 = arith.mulf %48, %311 : vector<2x256xf32>
      %313 = arith.addf %305, %312 : vector<2x256xf32>
      %c76 = arith.constant 76 : index
      %314 = memref.load %arg2[%c76] : memref<98xf32, #tpu.memory_space<smem>>
      %315 = vector.broadcast %314 : f32 to vector<2x256xf32>
      %316 = arith.mulf %78, %315 : vector<2x256xf32>
      %317 = arith.addf %309, %316 : vector<2x256xf32>
      %318 = arith.addf %313, %317 : vector<2x256xf32>
      %319 = arith.addf %202, %318 : vector<2x256xf32>
      %c28 = arith.constant 28 : index
      %320 = memref.load %arg2[%c28] : memref<98xf32, #tpu.memory_space<smem>>
      %321 = vector.broadcast %320 : f32 to vector<2x256xf32>
      %322 = arith.mulf %23, %321 : vector<2x256xf32>
      %c77 = arith.constant 77 : index
      %323 = memref.load %arg2[%c77] : memref<98xf32, #tpu.memory_space<smem>>
      %324 = vector.broadcast %323 : f32 to vector<2x256xf32>
      %325 = arith.mulf %53, %324 : vector<2x256xf32>
      %c29 = arith.constant 29 : index
      %326 = memref.load %arg2[%c29] : memref<98xf32, #tpu.memory_space<smem>>
      %327 = vector.broadcast %326 : f32 to vector<2x256xf32>
      %328 = arith.mulf %28, %327 : vector<2x256xf32>
      %329 = arith.addf %322, %328 : vector<2x256xf32>
      %c78 = arith.constant 78 : index
      %330 = memref.load %arg2[%c78] : memref<98xf32, #tpu.memory_space<smem>>
      %331 = vector.broadcast %330 : f32 to vector<2x256xf32>
      %332 = arith.mulf %58, %331 : vector<2x256xf32>
      %333 = arith.addf %325, %332 : vector<2x256xf32>
      %c30 = arith.constant 30 : index
      %334 = memref.load %arg2[%c30] : memref<98xf32, #tpu.memory_space<smem>>
      %335 = vector.broadcast %334 : f32 to vector<2x256xf32>
      %336 = arith.mulf %33, %335 : vector<2x256xf32>
      %337 = arith.addf %329, %336 : vector<2x256xf32>
      %c79 = arith.constant 79 : index
      %338 = memref.load %arg2[%c79] : memref<98xf32, #tpu.memory_space<smem>>
      %339 = vector.broadcast %338 : f32 to vector<2x256xf32>
      %340 = arith.mulf %63, %339 : vector<2x256xf32>
      %341 = arith.addf %333, %340 : vector<2x256xf32>
      %c31 = arith.constant 31 : index
      %342 = memref.load %arg2[%c31] : memref<98xf32, #tpu.memory_space<smem>>
      %343 = vector.broadcast %342 : f32 to vector<2x256xf32>
      %344 = arith.mulf %17, %343 : vector<2x256xf32>
      %345 = arith.addf %337, %344 : vector<2x256xf32>
      %c80 = arith.constant 80 : index
      %346 = memref.load %arg2[%c80] : memref<98xf32, #tpu.memory_space<smem>>
      %347 = vector.broadcast %346 : f32 to vector<2x256xf32>
      %348 = arith.mulf %18, %347 : vector<2x256xf32>
      %349 = arith.addf %341, %348 : vector<2x256xf32>
      %c32 = arith.constant 32 : index
      %350 = memref.load %arg2[%c32] : memref<98xf32, #tpu.memory_space<smem>>
      %351 = vector.broadcast %350 : f32 to vector<2x256xf32>
      %352 = arith.mulf %38, %351 : vector<2x256xf32>
      %353 = arith.addf %345, %352 : vector<2x256xf32>
      %c81 = arith.constant 81 : index
      %354 = memref.load %arg2[%c81] : memref<98xf32, #tpu.memory_space<smem>>
      %355 = vector.broadcast %354 : f32 to vector<2x256xf32>
      %356 = arith.mulf %68, %355 : vector<2x256xf32>
      %357 = arith.addf %349, %356 : vector<2x256xf32>
      %c33 = arith.constant 33 : index
      %358 = memref.load %arg2[%c33] : memref<98xf32, #tpu.memory_space<smem>>
      %359 = vector.broadcast %358 : f32 to vector<2x256xf32>
      %360 = arith.mulf %43, %359 : vector<2x256xf32>
      %361 = arith.addf %353, %360 : vector<2x256xf32>
      %c82 = arith.constant 82 : index
      %362 = memref.load %arg2[%c82] : memref<98xf32, #tpu.memory_space<smem>>
      %363 = vector.broadcast %362 : f32 to vector<2x256xf32>
      %364 = arith.mulf %73, %363 : vector<2x256xf32>
      %365 = arith.addf %357, %364 : vector<2x256xf32>
      %c34 = arith.constant 34 : index
      %366 = memref.load %arg2[%c34] : memref<98xf32, #tpu.memory_space<smem>>
      %367 = vector.broadcast %366 : f32 to vector<2x256xf32>
      %368 = arith.mulf %48, %367 : vector<2x256xf32>
      %369 = arith.addf %361, %368 : vector<2x256xf32>
      %c83 = arith.constant 83 : index
      %370 = memref.load %arg2[%c83] : memref<98xf32, #tpu.memory_space<smem>>
      %371 = vector.broadcast %370 : f32 to vector<2x256xf32>
      %372 = arith.mulf %78, %371 : vector<2x256xf32>
      %373 = arith.addf %365, %372 : vector<2x256xf32>
      %374 = arith.addf %369, %373 : vector<2x256xf32>
      %c240_i32 = arith.constant 240 : i32
      %375 = tpu.dynamic_rotate %374 by %c240_i32 dim 1 : vector<2x256xf32>, i32 -> vector<2x256xf32>
      %c4_73 = arith.constant 4 : index
      %c0_74 = arith.constant 0 : index
      %c0_75 = arith.constant 0 : index
      %376 = vector.load %arg3[%c4_73, %c0_74, %c0_75] : memref<14x1x256xf32, #tpu.memory_space<vmem>>, vector<1x1x256xf32>
      %377 = vector.shape_cast %376 : vector<1x1x256xf32> to vector<1x256xf32>
      %378 = vector.broadcast %377 : vector<1x256xf32> to vector<2x256xf32>
      %379 = arith.mulf %375, %378 : vector<2x256xf32>
      %380 = arith.addf %263, %379 : vector<2x256xf32>
      %c35 = arith.constant 35 : index
      %381 = memref.load %arg2[%c35] : memref<98xf32, #tpu.memory_space<smem>>
      %382 = vector.broadcast %381 : f32 to vector<2x256xf32>
      %383 = arith.mulf %23, %382 : vector<2x256xf32>
      %c84 = arith.constant 84 : index
      %384 = memref.load %arg2[%c84] : memref<98xf32, #tpu.memory_space<smem>>
      %385 = vector.broadcast %384 : f32 to vector<2x256xf32>
      %386 = arith.mulf %53, %385 : vector<2x256xf32>
      %c36 = arith.constant 36 : index
      %387 = memref.load %arg2[%c36] : memref<98xf32, #tpu.memory_space<smem>>
      %388 = vector.broadcast %387 : f32 to vector<2x256xf32>
      %389 = arith.mulf %28, %388 : vector<2x256xf32>
      %390 = arith.addf %383, %389 : vector<2x256xf32>
      %c85 = arith.constant 85 : index
      %391 = memref.load %arg2[%c85] : memref<98xf32, #tpu.memory_space<smem>>
      %392 = vector.broadcast %391 : f32 to vector<2x256xf32>
      %393 = arith.mulf %58, %392 : vector<2x256xf32>
      %394 = arith.addf %386, %393 : vector<2x256xf32>
      %c37 = arith.constant 37 : index
      %395 = memref.load %arg2[%c37] : memref<98xf32, #tpu.memory_space<smem>>
      %396 = vector.broadcast %395 : f32 to vector<2x256xf32>
      %397 = arith.mulf %33, %396 : vector<2x256xf32>
      %398 = arith.addf %390, %397 : vector<2x256xf32>
      %c86 = arith.constant 86 : index
      %399 = memref.load %arg2[%c86] : memref<98xf32, #tpu.memory_space<smem>>
      %400 = vector.broadcast %399 : f32 to vector<2x256xf32>
      %401 = arith.mulf %63, %400 : vector<2x256xf32>
      %402 = arith.addf %394, %401 : vector<2x256xf32>
      %c38 = arith.constant 38 : index
      %403 = memref.load %arg2[%c38] : memref<98xf32, #tpu.memory_space<smem>>
      %404 = vector.broadcast %403 : f32 to vector<2x256xf32>
      %405 = arith.mulf %17, %404 : vector<2x256xf32>
      %406 = arith.addf %398, %405 : vector<2x256xf32>
      %c87 = arith.constant 87 : index
      %407 = memref.load %arg2[%c87] : memref<98xf32, #tpu.memory_space<smem>>
      %408 = vector.broadcast %407 : f32 to vector<2x256xf32>
      %409 = arith.mulf %18, %408 : vector<2x256xf32>
      %410 = arith.addf %402, %409 : vector<2x256xf32>
      %c39 = arith.constant 39 : index
      %411 = memref.load %arg2[%c39] : memref<98xf32, #tpu.memory_space<smem>>
      %412 = vector.broadcast %411 : f32 to vector<2x256xf32>
      %413 = arith.mulf %38, %412 : vector<2x256xf32>
      %414 = arith.addf %406, %413 : vector<2x256xf32>
      %c88 = arith.constant 88 : index
      %415 = memref.load %arg2[%c88] : memref<98xf32, #tpu.memory_space<smem>>
      %416 = vector.broadcast %415 : f32 to vector<2x256xf32>
      %417 = arith.mulf %68, %416 : vector<2x256xf32>
      %418 = arith.addf %410, %417 : vector<2x256xf32>
      %c40 = arith.constant 40 : index
      %419 = memref.load %arg2[%c40] : memref<98xf32, #tpu.memory_space<smem>>
      %420 = vector.broadcast %419 : f32 to vector<2x256xf32>
      %421 = arith.mulf %43, %420 : vector<2x256xf32>
      %422 = arith.addf %414, %421 : vector<2x256xf32>
      %c89 = arith.constant 89 : index
      %423 = memref.load %arg2[%c89] : memref<98xf32, #tpu.memory_space<smem>>
      %424 = vector.broadcast %423 : f32 to vector<2x256xf32>
      %425 = arith.mulf %73, %424 : vector<2x256xf32>
      %426 = arith.addf %418, %425 : vector<2x256xf32>
      %c41 = arith.constant 41 : index
      %427 = memref.load %arg2[%c41] : memref<98xf32, #tpu.memory_space<smem>>
      %428 = vector.broadcast %427 : f32 to vector<2x256xf32>
      %429 = arith.mulf %48, %428 : vector<2x256xf32>
      %430 = arith.addf %422, %429 : vector<2x256xf32>
      %c90 = arith.constant 90 : index
      %431 = memref.load %arg2[%c90] : memref<98xf32, #tpu.memory_space<smem>>
      %432 = vector.broadcast %431 : f32 to vector<2x256xf32>
      %433 = arith.mulf %78, %432 : vector<2x256xf32>
      %434 = arith.addf %426, %433 : vector<2x256xf32>
      %435 = arith.addf %430, %434 : vector<2x256xf32>
      %c224_i32 = arith.constant 224 : i32
      %436 = tpu.dynamic_rotate %435 by %c224_i32 dim 1 : vector<2x256xf32>, i32 -> vector<2x256xf32>
      %c5_76 = arith.constant 5 : index
      %c0_77 = arith.constant 0 : index
      %c0_78 = arith.constant 0 : index
      %437 = vector.load %arg3[%c5_76, %c0_77, %c0_78] : memref<14x1x256xf32, #tpu.memory_space<vmem>>, vector<1x1x256xf32>
      %438 = vector.shape_cast %437 : vector<1x1x256xf32> to vector<1x256xf32>
      %439 = vector.broadcast %438 : vector<1x256xf32> to vector<2x256xf32>
      %440 = arith.mulf %436, %439 : vector<2x256xf32>
      %441 = arith.addf %319, %440 : vector<2x256xf32>
      %c42 = arith.constant 42 : index
      %442 = memref.load %arg2[%c42] : memref<98xf32, #tpu.memory_space<smem>>
      %443 = vector.broadcast %442 : f32 to vector<2x256xf32>
      %444 = arith.mulf %23, %443 : vector<2x256xf32>
      %c91 = arith.constant 91 : index
      %445 = memref.load %arg2[%c91] : memref<98xf32, #tpu.memory_space<smem>>
      %446 = vector.broadcast %445 : f32 to vector<2x256xf32>
      %447 = arith.mulf %53, %446 : vector<2x256xf32>
      %c43 = arith.constant 43 : index
      %448 = memref.load %arg2[%c43] : memref<98xf32, #tpu.memory_space<smem>>
      %449 = vector.broadcast %448 : f32 to vector<2x256xf32>
      %450 = arith.mulf %28, %449 : vector<2x256xf32>
      %451 = arith.addf %444, %450 : vector<2x256xf32>
      %c92 = arith.constant 92 : index
      %452 = memref.load %arg2[%c92] : memref<98xf32, #tpu.memory_space<smem>>
      %453 = vector.broadcast %452 : f32 to vector<2x256xf32>
      %454 = arith.mulf %58, %453 : vector<2x256xf32>
      %455 = arith.addf %447, %454 : vector<2x256xf32>
      %c44 = arith.constant 44 : index
      %456 = memref.load %arg2[%c44] : memref<98xf32, #tpu.memory_space<smem>>
      %457 = vector.broadcast %456 : f32 to vector<2x256xf32>
      %458 = arith.mulf %33, %457 : vector<2x256xf32>
      %459 = arith.addf %451, %458 : vector<2x256xf32>
      %c93 = arith.constant 93 : index
      %460 = memref.load %arg2[%c93] : memref<98xf32, #tpu.memory_space<smem>>
      %461 = vector.broadcast %460 : f32 to vector<2x256xf32>
      %462 = arith.mulf %63, %461 : vector<2x256xf32>
      %463 = arith.addf %455, %462 : vector<2x256xf32>
      %c45 = arith.constant 45 : index
      %464 = memref.load %arg2[%c45] : memref<98xf32, #tpu.memory_space<smem>>
      %465 = vector.broadcast %464 : f32 to vector<2x256xf32>
      %466 = arith.mulf %17, %465 : vector<2x256xf32>
      %467 = arith.addf %459, %466 : vector<2x256xf32>
      %c94 = arith.constant 94 : index
      %468 = memref.load %arg2[%c94] : memref<98xf32, #tpu.memory_space<smem>>
      %469 = vector.broadcast %468 : f32 to vector<2x256xf32>
      %470 = arith.mulf %18, %469 : vector<2x256xf32>
      %471 = arith.addf %463, %470 : vector<2x256xf32>
      %c46 = arith.constant 46 : index
      %472 = memref.load %arg2[%c46] : memref<98xf32, #tpu.memory_space<smem>>
      %473 = vector.broadcast %472 : f32 to vector<2x256xf32>
      %474 = arith.mulf %38, %473 : vector<2x256xf32>
      %475 = arith.addf %467, %474 : vector<2x256xf32>
      %c95 = arith.constant 95 : index
      %476 = memref.load %arg2[%c95] : memref<98xf32, #tpu.memory_space<smem>>
      %477 = vector.broadcast %476 : f32 to vector<2x256xf32>
      %478 = arith.mulf %68, %477 : vector<2x256xf32>
      %479 = arith.addf %471, %478 : vector<2x256xf32>
      %c47 = arith.constant 47 : index
      %480 = memref.load %arg2[%c47] : memref<98xf32, #tpu.memory_space<smem>>
      %481 = vector.broadcast %480 : f32 to vector<2x256xf32>
      %482 = arith.mulf %43, %481 : vector<2x256xf32>
      %483 = arith.addf %475, %482 : vector<2x256xf32>
      %c96 = arith.constant 96 : index
      %484 = memref.load %arg2[%c96] : memref<98xf32, #tpu.memory_space<smem>>
      %485 = vector.broadcast %484 : f32 to vector<2x256xf32>
      %486 = arith.mulf %73, %485 : vector<2x256xf32>
      %487 = arith.addf %479, %486 : vector<2x256xf32>
      %c48 = arith.constant 48 : index
      %488 = memref.load %arg2[%c48] : memref<98xf32, #tpu.memory_space<smem>>
      %489 = vector.broadcast %488 : f32 to vector<2x256xf32>
      %490 = arith.mulf %48, %489 : vector<2x256xf32>
      %491 = arith.addf %483, %490 : vector<2x256xf32>
      %c97 = arith.constant 97 : index
      %492 = memref.load %arg2[%c97] : memref<98xf32, #tpu.memory_space<smem>>
      %493 = vector.broadcast %492 : f32 to vector<2x256xf32>
      %494 = arith.mulf %78, %493 : vector<2x256xf32>
      %495 = arith.addf %487, %494 : vector<2x256xf32>
      %496 = arith.addf %491, %495 : vector<2x256xf32>
      %c208_i32 = arith.constant 208 : i32
      %497 = tpu.dynamic_rotate %496 by %c208_i32 dim 1 : vector<2x256xf32>, i32 -> vector<2x256xf32>
      %c6_79 = arith.constant 6 : index
      %c0_80 = arith.constant 0 : index
      %c0_81 = arith.constant 0 : index
      %498 = vector.load %arg3[%c6_79, %c0_80, %c0_81] : memref<14x1x256xf32, #tpu.memory_space<vmem>>, vector<1x1x256xf32>
      %499 = vector.shape_cast %498 : vector<1x1x256xf32> to vector<1x256xf32>
      %500 = vector.broadcast %499 : vector<1x256xf32> to vector<2x256xf32>
      %501 = arith.mulf %497, %500 : vector<2x256xf32>
      %502 = arith.addf %380, %501 : vector<2x256xf32>
      %503 = arith.addf %502, %441 : vector<2x256xf32>
      %504 = arith.negf %503 : vector<2x256xf32>
      %505 = math.exp %504 : vector<2x256xf32>
      %cst_82 = arith.constant 1.000000e+00 : f32
      %506 = vector.broadcast %cst_82 : f32 to vector<2x256xf32>
      %507 = arith.addf %506, %505 : vector<2x256xf32>
      %508 = arith.divf %506, %507 : vector<2x256xf32>
      %c0_83 = arith.constant 0 : index
      %c0_84 = arith.constant 0 : index
      %509 = vector.load %arg5[%c0_83, %c0_84] : memref<2x256xf32, #tpu.memory_space<vmem>>, vector<2x256xf32>
      tpu.vector_store %arg5[%c0_83, %c0_84], %508 {strides = array<i32>} : memref<2x256xf32, #tpu.memory_space<vmem>>, vector<2x256xf32>,
    } else {
    }
    return
  }
  func.func @transform_0(%arg0: i32, %arg1: i32) -> i32 {
    %c0_i32 = arith.constant 0 : i32
    %c0_i32_0 = arith.constant 0 : i32
    return %c0_i32 : i32
  }
  func.func @transform_1(%arg0: i32, %arg1: i32) -> (i32, i32, i32) {
    %c0_i32 = arith.constant 0 : i32
    %c0_i32_0 = arith.constant 0 : i32
    %c0_i32_1 = arith.constant 0 : i32
    %c0_i32_2 = arith.constant 0 : i32
    return %c0_i32, %c0_i32_0, %c0_i32_1 : i32, i32, i32
  }
  func.func @transform_2(%arg0: i32, %arg1: i32) -> (i32, i32, i32) {
    %c0_i32 = arith.constant 0 : i32
    %c0_i32_0 = arith.constant 0 : i32
    return %arg0, %arg1, %c0_i32 : i32, i32, i32
  }
  func.func @transform_3(%arg0: i32, %arg1: i32) -> (i32, i32) {
    %c0_i32 = arith.constant 0 : i32
    %c0_i32_0 = arith.constant 0 : i32
    return %arg0, %c0_i32 : i32, i32
  }
}

</mosaic_0001>

<bundles_post_ra>
// kernel: tpu_custom_call.1
= control target key start
LH: loop header
LB: loop body
LE: loop exit
PB: predicated region body
PF: predicated region fallthrough
CT: control target
= control target key end

     0   :  { %s2865_s0 = inlined_call_operand.hbm [shape: f32[98], index: 0, kind: input, shape index: {}]   ;;  %s2866_s1 = inlined_call_operand.hbm [shape: f32[14,1,256], index: 1, kind: input, shape index: {}]   ;;  %s2867_s2 = inlined_call_operand.hbm [shape: f32[2,4,256], index: 2, kind: input, shape index: {}]   ;;  %s2868_s3 = inlined_call_operand.hbm [shape: f32[2,256], index: 3, kind: output, shape index: {}]  }
   0x1   :  { %3009 = sst [smem:[#allocation96_spill]] %s2868_s3 }
   0x2   :  { %8 = vsyncpa [#allocation7], 0 }
   0x3   :  { %9 = vsyncpa [#allocation5], 0 }
   0x4   :  { %10 = vsyncpa [#allocation10], 0 }
   0x5   :  { %11 = vsyncpa [#allocation6], 0  ;;  %s1436_s14 = scalar_lea.hbm %s2865_s0, 16 }
   0x6   :  { %p1437_p0 = scmp.ne.s32.totalorder %s2865_s0, %s1436_s14  ;;  %p1440_p1 = scmp.lt.u32.totalorder %s1436_s14, %s2865_s0 }
   0x8   :  { %p1442_p2 = pnand %p1440_p1, %p1437_p0 }
   0xa   :  { %1445 = shalt.err (!%p1442_p2)
}
   0xb   :  { %s1520_s19 = smov [#allocation4]   ;;  %s1521_s22 = smov [#allocation8]  }
   0xc   :  { %19 = dma.hbm_to_smem %s2865_s0, 16, %s1520_s19, [#allocation7]  }
   0xd   :  { %s25_s23 = sshll.u32 %s1521_s22, 4  ;;  %s1446_s26 = scalar_lea.hbm %s2866_s1, 448  ;;  %s26_s23 = int_to_ptr.vmem [resolvable:$true] %s25_s23 }
   0xe   :  { %p1447_p3 = scmp.ne.s32.totalorder %s2866_s1, %s1446_s26  ;;  %p1450_p4 = scmp.lt.u32.totalorder %s1446_s26, %s2866_s1 }
  0x10   :  { %p1452_p5 = pnand %p1450_p4, %p1447_p3 }
  0x12   :  { %1455 = shalt.err (!%p1452_p5)
}
  0x13   :  { %s1456_s4 = scalar_lea.vmem %s26_s23, 448  ;;  %p1461_p7 = scmp.lt.s32.totalorder %s26_s23, %s26_s23 }
  0x14   :  { %p1457_p6 = scmp.ne.s32.totalorder %s26_s23, %s1456_s4  ;;  %p1462_p8 = scmp.lt.s32.totalorder %s1456_s4, %s1456_s4 }
  0x16   :  { %p1463_p9 = por %p1462_p8, %p1461_p7 }
  0x18   :  { %p1464_p10 = pnand %p1463_p9, %p1457_p6 }
  0x1a   :  { %1467 = shalt.err (!%p1464_p10)
}
  0x1b   :  { %s2869_s0 = smov 32   ;;  %s1523_s5 = smov 2  }
  0x1c   :  { %31 = dma.hbm_to_vmem [thread:$0]  %s2866_s1, 448, %s26_s23, [#allocation5], %s2869_s0, %s2869_s0, %s1523_s5  }
  0x1d   :  { %s1524_s8 = smov [#allocation9]   ;;  %s1468_s12 = scalar_lea.hbm %s2867_s2, 256 }
  0x1e   :  { %s37_s9 = sshll.u32 %s1524_s8, 4  ;;  %p1469_p11 = scmp.ne.s32.totalorder %s2867_s2, %s1468_s12  ;;  %s38_s9 = int_to_ptr.vmem [resolvable:$true] %s37_s9 }
  0x1f   :  { %p1472_p12 = scmp.lt.u32.totalorder %s1468_s12, %s2867_s2 }
  0x21   :  { %p1474_p13 = pnand %p1472_p12, %p1469_p11 }
  0x23   :  { %1477 = shalt.err (!%p1474_p13)
}
  0x24   :  { %s1478_s17 = scalar_lea.vmem %s38_s9, 256  ;;  %p1483_p1 = scmp.lt.s32.totalorder %s38_s9, %s38_s9 }
  0x25   :  { %p1479_p0 = scmp.ne.s32.totalorder %s38_s9, %s1478_s17  ;;  %p1484_p2 = scmp.lt.s32.totalorder %s1478_s17, %s1478_s17 }
  0x27   :  { %p1485_p3 = por %p1484_p2, %p1483_p1 }
  0x29   :  { %p1486_p4 = pnand %p1485_p3, %p1479_p0 }
  0x2b   :  { %1489 = shalt.err (!%p1486_p4)
}
  0x2c   :  { %s1525_s1 = smov 128   ;;  %s1526_s18 = smov 8  }
  0x2d   :  { %43 = dma.hbm_to_vmem [thread:$0]  %s2867_s2, 256, %s38_s9, [#allocation10], %s1525_s1, %s1525_s1, %s1526_s18  }
  0x2e   :  { %1512 = dma.done.wait [#allocation7], 16  }
  0x2f   :  { %1513 = vsyncadd [#allocation7], 4294967280 }
  0x30   :  { %1514 = dma.done.wait [#allocation5], 448  }
  0x31   :  { %1515 = vsyncadd [#allocation5], 4294966848 }
  0x32   :  { %1516 = dma.done.wait [#allocation10], 256  }
  0x33   :  { %1517 = vsyncadd [#allocation10], 4294967040 }
  0x34   :  { %53 = sfence }
  0x35   :  { %v60_v0 = vld [vmem:[#allocation9] sm:$0xff]  ;;  %v61_v1 = vld [vmem:[#allocation9 + $0x8] sm:$0xff]  ;;  %vm69_vm0 = vcmask 1043456   ;;  %v106_v2 = vlaneseq  ;;  %v1527_v3 = vmov -inf   ;;  %v1528_v12 = vmov 1983009808  }
  0x36   :  { %59 = vst [vmem:[#allocation3] sm:$0xf] %v1527_v3  ;;  %v65_v4 = vcombine.high %v60_v0, %v60_v0  ;;  %v66_v5 = vcombine.high %v61_v1, %v61_v1  ;;  %v70_v6 = vsel %vm69_vm0, %v60_v0, 0.0  ;;  %v84_v7 = vsel %vm69_vm0, %v61_v1, 0.0  ;;  %s1530_s2 = smov 3   ;;  %s1531_s21 = smov 1  }
  0x37   :  { %v71_v8 = vrot.slane %v70_v6, 4  ;;  %v85_v9 = vrot.slane %v84_v7, 4  ;;  %v104_v13 = vunpack.c.l.s4 %v1528_v12  ;;  %v1605_v18 = vshrl.u32 %v106_v2, 7  ;;  %s1532_s22 = smov 127   ;;  %s1533_s23 = smov 126  }
  0x38   :  { %v77_v10 = vsel %vm69_vm0, %v65_v4, 0.0  ;;  %v91_v11 = vsel %vm69_vm0, %v66_v5, 0.0  ;;  %v135_v19 = vsel %vm69_vm0, %v60_v0, -inf  ;;  %v142_v26 = vsel %vm69_vm0, %v65_v4, -inf  ;;  %s1534_s24 = smov 125   ;;  %s1636_s25 = sld [smem:[#allocation4 + $0x31]] }
  0x39   :  { %v72_v14 = vadd.f32 %v71_v8, %v70_v6  ;;  %v78_v15 = vrot.slane %v77_v10, 4  ;;  %v86_v16 = vadd.f32 %v85_v9, %v84_v7  ;;  %v92_v17 = vrot.slane %v91_v11, 4  ;;  %s1638_s26 = sld [smem:[#allocation4 + $0x32]]  ;;  %s1640_s27 = sld [smem:[#allocation4 + $0x3f]] }
  0x3a   :  { %v105_v24 = vunpack.c.0.s8 %v104_v13  ;;  %v136_v25 = vrot.slane %v135_v19, 4  ;;  %v149_v27 = vsel %vm69_vm0, %v61_v1, -inf  ;;  %v143_v33 = vrot.slane %v142_v26, 4  ;;  %s1642_s28 = sld [smem:[#allocation4 + $0x34]]  ;;  %s1644_s29 = sld [smem:[#allocation4 + $0x40]] }
  0x3b   :  { %v73_v20 = vrot.slane %v72_v14, 2  ;;  %v79_v21 = vadd.f32 %v78_v15, %v77_v10  ;;  %v87_v22 = vrot.slane %v86_v16, 2  ;;  %v93_v23 = vadd.f32 %v92_v17, %v91_v11  ;;  %s1646_s30 = sld [smem:[#allocation4 + $0x33]]  ;;  %s1339_s4 = sld [smem:[#allocation4 + $0x42]] }
  0x3c   :  { %v137_v32 = vmax.f32 %v135_v19, %v136_v25  ;;  %v150_v34 = vrot.slane %v149_v27, 4  ;;  %v156_v35 = vsel %vm69_vm0, %v66_v5, -inf  ;;  %v144_v41 = vmax.f32 %v142_v26, %v143_v33  ;;  %s1650_s6 = sld [smem:[#allocation4 + $0x41]]  ;;  %s1652_s7 = sld [smem:[#allocation4 + $0x43]] }
  0x3d   :  { %v74_v28 = vadd.f32 %v73_v20, %v72_v14  ;;  %v80_v29 = vrot.slane %v79_v21, 2  ;;  %v88_v30 = vadd.f32 %v87_v22, %v86_v16  ;;  %v94_v31 = vrot.slane %v93_v23, 2  ;;  %s1654_s8 = sld [smem:[#allocation4 + $0x38]]  ;;  %s1656_s9 = sld [smem:[#allocation4 + $0x1]] }
  0x3e   :  { %v138_v40 = vrot.slane %v137_v32, 2  ;;  %v151_v42 = vmax.f32 %v149_v27, %v150_v34  ;;  %v157_v43 = vrot.slane %v156_v35, 4  ;;  %v145_v49 = vrot.slane %v144_v41, 2  ;;  %3010 = sst [smem:[#allocation16_spill]] %s1636_s25  ;;  %s1658_s10 = sld [smem:[#allocation4 + $0x39]] }
  0x3f   :  { %v75_v36 = vrot.slane %v74_v28, 1  ;;  %v81_v37 = vadd.f32 %v80_v29, %v79_v21  ;;  %v89_v38 = vrot.slane %v88_v30, 1  ;;  %v95_v39 = vadd.f32 %v94_v31, %v93_v23  ;;  %v134_v23 = vld [vmem:[#allocation3] sm:$0xf]  ;;  %3011 = sst [smem:[#allocation17_spill]] %s1638_s26  ;;  %s1660_s11 = sld [smem:[#allocation4 + $0xf]] }
  0x40   :  { %v139_v48 = vmax.f32 %v137_v32, %v138_v40  ;;  %v152_v50 = vrot.slane %v151_v42, 2  ;;  %v158_v51 = vmax.f32 %v156_v35, %v157_v43  ;;  %v1612_v54 = vsub.s32 %v105_v24, %v1605_v18  ;;  %3012 = sst [smem:[#allocation18_spill]] %s1640_s27  ;;  %s1662_s12 = sld [smem:[#allocation4 + $0x3b]] }
  0x41   :  { %v76_v44 = vadd.f32 %v75_v36, %v74_v28  ;;  %v82_v45 = vrot.slane %v81_v37, 1  ;;  %v90_v46 = vadd.f32 %v89_v38, %v88_v30  ;;  %v96_v47 = vrot.slane %v95_v39, 1  ;;  %3013 = sst [smem:[#allocation19_spill]] %s1644_s29  ;;  %s1664_s13 = sld [smem:[#allocation4 + $0x3a]] }
  0x42   :  { %v140_v55 = vrot.slane %v139_v48, 1  ;;  %v146_v56 = vmax.f32 %v144_v41, %v145_v49  ;;  %v153_v57 = vmax.f32 %v151_v42, %v152_v50  ;;  %v159_v58 = vrot.slane %v158_v51, 2  ;;  %3014 = sst [smem:[#allocation20_spill]] %s1646_s30  ;;  %s1666_s14 = sld [smem:[#allocation4 + $0x4d]]  ;;  %v242_v42 = vld [vmem:[#allocation8 + $0x10] sm:$0x3] }
  0x43   :  { %v83_v52 = vadd.f32 %v82_v45, %v81_v37  ;;  %v97_v53 = vadd.f32 %v96_v47, %v95_v39  ;;  %v1529_v59 = vmov 0.0   ;;  %vm123_vm1 = vcmask 1041409   ;;  %3016 = sst [smem:[#allocation22_spill]] %s1650_s6  ;;  %s1668_s15 = sld [smem:[#allocation4 + $0x2]]  ;;  %v220_v39 = vld [vmem:[#allocation8 + $0xe] sm:$0x3] }
  0x44   :  { %58 = vst [vmem:[#allocation2] sm:$0xf] %v1529_v59  ;;  %v141_v62 = vmax.f32 %v139_v48, %v140_v55  ;;  %v147_v63 = vrot.slane %v146_v56, 1  ;;  %v154_v0 = vrot.slane %v153_v57, 1  ;;  %v160_v1 = vmax.f32 %v158_v51, %v159_v58  ;;  %3017 = sst [smem:[#allocation23_spill]] %s1652_s7  ;;  %s1670_s16 = sld [smem:[#allocation4 + $0x10]] }
  0x45   :  { %v102_v60 = vcombine.low %v76_v44, %v83_v52  ;;  %v110_v61 = vcombine.low %v90_v46, %v97_v53  ;;  %vm125_vm2 = vcmask 1043459   ;;  %vm127_vm3 = vcmask 1045509   ;;  %3018 = sst [smem:[#allocation24_spill]] %s1654_s8  ;;  %s1674_s1 = sld [smem:[#allocation4 + $0x3]]  ;;  %v286_v48 = vld [vmem:[#allocation8 + $0x16] sm:$0x3] }
  0x46   :  { %v148_v5 = vmax.f32 %v146_v56, %v147_v63  ;;  %v155_v6 = vmax.f32 %v153_v57, %v154_v0  ;;  %v161_v7 = vrot.slane %v160_v1, 1  ;;  %vm129_vm4 = vcmask 1047559   ;;  %3019 = sst [smem:[#allocation25_spill]] %s1656_s9  ;;  %s1672_s17 = sld [smem:[#allocation4]] }
  0x47   :  { %v109_v3 = vrot.slane %v102_v60, %v1612_v54  ;;  %v117_v4 = vrot.slane %v110_v61, %v1612_v54  ;;  %3020 = sst [smem:[#allocation26_spill]] %s1658_s10  ;;  %s1676_s18 = sld [smem:[#allocation4 + $0xe]]  ;;  %v452_v35 = vstv %s1642_s28  ;;  %v703_v36 = vstv %s1339_s4 }
  0x48   :  { %v162_v9 = vmax.f32 %v160_v1, %v161_v7  ;;  %v167_v10 = vcombine.low %v141_v62, %v148_v5  ;;  %3021 = sst [smem:[#allocation27_spill]] %s1660_s11  ;;  %s1678_s19 = sld [smem:[#allocation4 + $0x11]]  ;;  %v1690_v37 = vsub.s32 0, %v1605_v18  ;;  %v1693_v38 = vsub.s32 1, %v1605_v18  ;;  %v264_v18 = vld [vmem:[#allocation8 + $0x12] sm:$0x3] }
  0x49   :  { %v122_v8 = vrot.slane %v117_v4, 7  ;;  %3022 = sst [smem:[#allocation28_spill]] %s1664_s13  ;;  %s1700_s28 = sld [smem:[#allocation4 + $0x5]]  ;;  %v1714_v43 = vand.u32 127, %v106_v2  ;;  %v577_v46 = vstv %s1662_s12  ;;  %v408_v53 = vstv %s1636_s25  ;;  %v308_v5 = vld [vmem:[#allocation8 + $0x18] sm:$0x3] }
  0x4a   :  { %v175_v13 = vcombine.low %v155_v6, %v162_v9  ;;  %v174_v17 = vrot.slane %v167_v10, %v1612_v54  ;;  %3023 = sst [smem:[#allocation29_spill]] %s1666_s14  ;;  %s1681_s20 = sld [smem:[#allocation4 + $0x4]]  ;;  %3032 = vst [vmem:[#allocation38_spill] sm:$0xff] %v1690_v37  ;;  %3033 = vst [vmem:[#allocation39_spill] sm:$0xff] %v1693_v38  ;;  %v1717_v44 = vrot.slane %v220_v39, %v1690_v37  ;;  %v659_v55 = vstv %s1640_s27 }
  0x4b   :  { %v124_v11 = vsel %vm123_vm1, %v122_v8, %v109_v3  ;;  %v62_v14 = vld [vmem:[#allocation2] sm:$0xf]  ;;  %3024 = sst [smem:[#allocation30_spill]] %s1668_s15  ;;  %s1703_s4 = sld [smem:[#allocation4 + $0x44]]  ;;  %v1720_v45 = vrot.slane %v220_v39, %v1693_v38  ;;  %v1728_v47 = vrot.slane %v242_v42, %v1690_v37  ;;  %v1731_v2 = vrot.slane %v242_v42, %v1693_v38 }
  0x4c   :  { %v126_v12 = vsel %vm125_vm2, %v122_v8, %v124_v11  ;;  %v182_v19 = vrot.slane %v175_v13, %v1612_v54  ;;  %3025 = sst [smem:[#allocation31_spill]] %s1670_s16  ;;  %s1705_s0 = sld [smem:[#allocation4 + $0x13]]  ;;  %v1744_v51 = vrot.slane %v264_v18, %v1690_v37  ;;  %v1747_v52 = vrot.slane %v264_v18, %v1693_v38 }
  0x4d   :  { %v128_v15 = vsel %vm127_vm3, %v122_v8, %v126_v12  ;;  %3026 = sst [smem:[#allocation32_spill]] %s1672_s17  ;;  %s1751_s12 = sld [smem:[#allocation4 + $0xa]]  ;;  %v418_v56 = vstv %s1638_s26  ;;  %v436_v57 = vstv %s1674_s1  ;;  %v669_v58 = vstv %s1644_s29 }
  0x4e   :  { %v130_v16 = vsel %vm129_vm4, %v122_v8, %v128_v15  ;;  %v185_v21 = vrot.slane %v182_v19, 7  ;;  %3027 = sst [smem:[#allocation33_spill]] %s1676_s18  ;;  %s1707_s3 = sld [smem:[#allocation4 + $0x50]]  ;;  %v1764_v60 = vrot.slane %v286_v48, %v1690_v37  ;;  %v1767_v61 = vrot.slane %v286_v48, %v1693_v38 }
  0x4f   :  { %v132_v20 = vadd.f32 %v130_v16, %v62_v14  ;;  %3035 = sst [smem:[#allocation41_spill]] %s1700_s28  ;;  %s1722_s28 = sld [smem:[#allocation4 + $0x6]]  ;;  %v687_v63 = vstv %s1678_s19  ;;  %v533_v8 = vstv %s1654_s8  ;;  %v543_v12 = vstv %s1658_s10 }
  0x50   :  { %v186_v22 = vsel %vm123_vm1, %v185_v21, %v174_v17  ;;  %3028 = sst [smem:[#allocation34_spill]] %s1681_s20  ;;  %s1771_s1 = sld [smem:[#allocation4 + $0x1d]]  ;;  %v889_v17 = vstv %s1666_s14  ;;  %v1812_v19 = vrot.slane %v308_v5, %v1690_v37  ;;  %vm216_vm5 = vcmp.lt.s32.totalorder %v1714_v43, 3 }
  0x51   :  { %133 = vst [vmem:[#allocation2] sm:$0xf] %v132_v20  ;;  %v187_v24 = vsel %vm125_vm2, %v185_v21, %v186_v22  ;;  %3036 = sst [smem:[#allocation42_spill]] %s1703_s4  ;;  %s1773_s26 = sld [smem:[#allocation4 + $0x1f]]  ;;  %v1815_v20 = vrot.slane %v308_v5, %v1693_v38  ;;  %vm238_vm6 = vcmp.lt.s32.totalorder %v1714_v43, 2  ;;  %vm260_vm7 = vcmp.lt.s32.totalorder %v1714_v43, 1 }
  0x52   :  { %v188_v25 = vsel %vm127_vm3, %v185_v21, %v187_v24  ;;  %3037 = sst [smem:[#allocation43_spill]] %s1705_s0  ;;  %s1724_s0 = sld [smem:[#allocation4 + $0x8]]  ;;  %vm282_vm8 = vcmp.lt.s32.totalorder %v1714_v43, 127  ;;  %vm304_vm9 = vcmp.lt.s32.totalorder %v1714_v43, 126  ;;  %vm326_vm10 = vcmp.lt.s32.totalorder %v1714_v43, 125 }
  0x53   :  { %v189_v26 = vsel %vm129_vm4, %v185_v21, %v188_v25  ;;  %s1781_s29 = sld [smem:[#allocation4 + $0xb]]  ;;  %s1783_s30 = sld [smem:[#allocation4 + $0x57]]  ;;  %v330_v21 = vld [vmem:[#allocation8 + $0x1a] sm:$0x3]  ;;  %vm509_vm11 = vcmp.lt.s32.totalorder %v1714_v43, 48  ;;  %vm760_vm12 = vcmp.lt.s32.totalorder %v1714_v43, 16 }
  0x54   :  { %v191_v27 = vmax.f32 %v134_v23, %v189_v26  ;;  %s1788_s19 = sld [smem:[#allocation4 + $0x1c]]  ;;  %v933_v9 = vstv %s1707_s3  ;;  %s1799_s6 = sld [smem:[#allocation4 + $0x3d]]  ;;  %vm634_vm13 = vcmp.lt.s32.totalorder %v1714_v43, 32  ;;  %vm990_vm14 = vcmp.lt.s32.totalorder %v1714_v43, 112 }
  0x55   :  { %3040 = sst [smem:[#allocation46_spill]] %s1722_s28  ;;  %s1801_s27 = sld [smem:[#allocation4 + $0x1e]]  ;;  %vm1116_vm15 = vcmp.lt.s32.totalorder %v1714_v43, 96  ;;  %vm1242_vm0 = vcmp.lt.s32.totalorder %v1714_v43, 80 }
  0x56   :  { %192 = vst [vmem:[#allocation3] sm:$0xf] %v191_v27  ;;  %3046 = sst [smem:[#allocation52_spill]] %s1771_s1  ;;  %s1806_s3 = sld [smem:[#allocation4 + $0xc]]  ;;  %v561_v27 = vstv %s1751_s12 }
  0x57   :  { %s1809_s9 = sld [smem:[#allocation4 + $0x56]]  ;;  %s1818_s7 = sld [smem:[#allocation4 + $0xd]]  ;;  %v917_v39 = vstv %s1773_s26 }
  0x58   :  { %v196_v28 = vld [vmem:[#allocation2] sm:$0xf]  ;;  %3041 = sst [smem:[#allocation47_spill]] %s1724_s0  ;;  %s1741_s0 = sld [smem:[#allocation4 + $0x9]] }
  0x59   :  { %v1624_v29 = vmul.f32 0.25, %v196_v28  ;;  %3047 = sst [smem:[#allocation53_spill]] %s1781_s29  ;;  %s1821_s11 = sld [smem:[#allocation4 + $0x20]]  ;;  %v1059_v18 = vstv %s1783_s30 }
  0x5a   :  { %3048 = sst [smem:[#allocation54_spill]] %s1788_s19  ;;  %s1829_s13 = sld [smem:[#allocation4 + $0x3e]] }
  0x5b   :  { %v206_v30 = vrot.slane %v1624_v29, %v1612_v54  ;;  %v437_v6 = vmul.f32 %v436_v57, %v1624_v29  ;;  %v688_v11 = vmul.f32 %v687_v63, %v1624_v29  ;;  %3050 = sst [smem:[#allocation56_spill]] %s1799_s6  ;;  %s1842_s14 = sld [smem:[#allocation4 + $0x5b]] }
  0x5c   :  { %3051 = sst [smem:[#allocation57_spill]] %s1801_s27  ;;  %s1831_s10 = sld [smem:[#allocation4 + $0x5e]] }
  0x5d   :  { %234 = vrot.lane.b32.xlu1 %v206_v30, %s1523_s5  ;;  %v1629_v31 = vld [vmem:[#allocation3] sm:$0xf]  ;;  %v207_v34 = vcombine.high %v206_v30, %v206_v30  ;;  %3052 = sst [smem:[#allocation58_spill]] %s1806_s3  ;;  %v1825_v25 = vrot.slane %v437_v6, %v1612_v54  ;;  %s1840_s17 = sld [smem:[#allocation4 + $0x26]] }
  0x5e   :  { %v351_v32 = vrot.slane %v1629_v31, %v1612_v54  ;;  %v453_v40 = vmul.f32 %v452_v35, %v1629_v31  ;;  %v704_v41 = vmul.f32 %v703_v36, %v1629_v31  ;;  %3043 = sst [smem:[#allocation49_spill]] %s1741_s0  ;;  %s1760_s0 = sld [smem:[#allocation4 + $0x45]]  ;;  %v578_v59 = vmul.f32 %v577_v46, %v1629_v31 }
  0x5f   :  { %3053 = sst [smem:[#allocation59_spill]] %s1809_s9  ;;  %v934_v23 = vmul.f32 %v933_v9, %v1629_v31  ;;  %s1850_s18 = sld [smem:[#allocation4 + $0x24]]  ;;  %v918_v9 = vmul.f32 %v917_v39, %v1624_v29 }
  0x60   :  { %355 = vrot.lane.b32.xlu0 %v351_v32, %s1530_s2  ;;  %v352_v33 = vcombine.high %v351_v32, %v351_v32  ;;  %v1734_v49 = vrot.slane %v453_v40, %v1612_v54  ;;  %v1737_v50 = vrot.slane %v704_v41, %v1612_v54  ;;  %v1797_v13 = vrot.slane %v578_v59, %v1612_v54  ;;  %3054 = sst [smem:[#allocation60_spill]] %s1818_s7  ;;  %s1852_s8 = sld [smem:[#allocation4 + $0x58]] }
  0x61   :  { %3056 = sst [smem:[#allocation61_spill]] %s1821_s11  ;;  %v1855_v40 = vrot.slane %v330_v21, %v1693_v38  ;;  %v562_v41 = vmul.f32 %v561_v27, %v1624_v29  ;;  %v1859_v42 = vrot.slane %v934_v23, %v1612_v54  ;;  %s1864_s26 = sld [smem:[#allocation4 + $0x5c]]  ;;  %v1060_v27 = vmul.f32 %v1059_v18, %v1629_v31 }
  0x62   :  { %357 = vrot.lane.b32.xlu1 %v352_v33, %s1530_s2  ;;  %3058 = sst [smem:[#allocation62_spill]] %s1842_s14  ;;  %s1871_s14 = sld [smem:[#allocation4 + $0x52]]  ;;  %v1914_v48 = vrot.slane %v918_v9, %v1612_v54 }
  0x63   :  { %s1882_s4 = sld [smem:[#allocation4 + $0x2d]]  ;;  %s1887_s16 = sld [smem:[#allocation4 + $0x22]]  ;;  %v1895_v57 = vrot.slane %v562_v41, %v1612_v54  ;;  %v1185_v41 = vstv %s1831_s10  ;;  %v1043_v63 = vstv %s1840_s17  ;;  %v1925_v35 = vrot.slane %v1060_v27, %v1612_v54 }
  0x64   :  { %363 = vrot.lane.b32.xlu0 %v351_v32, %s1523_s5  ;;  %3045 = sst [smem:[#allocation51_spill]] %s1760_s0  ;;  %s1901_s28 = sld [smem:[#allocation4 + $0x46]]  ;;  %v1044_v9 = vmul.f32 %v1043_v63, %v1624_v29 }
  0x65   :  { %3060 = sst [smem:[#allocation63_spill]] %s1850_s18  ;;  %s1873_s18 = sld [smem:[#allocation4 + $0x23]]  ;;  %3071 = vst [vmem:[#allocation68_spill] sm:$0xff] %v1925_v35 }
  0x66   :  { %365 = vrot.lane.b32.xlu1 %v352_v33, %s1523_s5  ;;  %3062 = sst [smem:[#allocation64_spill]] %s1852_s8  ;;  %s1890_s20 = sld [smem:[#allocation4 + $0x49]]  ;;  %v1983_v22 = vrot.slane %v1044_v9, %v1612_v54 }
  0x67   :  { %3066 = sst [smem:[#allocation66_spill]] %s1864_s26  ;;  %s1880_s26 = sld [smem:[#allocation4 + $0x21]] }
  0x68   :  { %371 = vrot.lane.b32.xlu0 %v351_v32, %s1531_s21  ;;  %s1906_s12 = sld [smem:[#allocation4 + $0x27]]  ;;  %s1908_s25 = sld [smem:[#allocation4 + $0x5d]]  ;;  %3079 = vst [vmem:[#allocation70_spill] sm:$0xff] %v1983_v22 }
  0x69   :  { %s1917_s8 = sld [smem:[#allocation4 + $0x28]]  ;;  %s1927_s10 = sld [smem:[#allocation4 + $0x29]]  ;;  %v1169_v27 = vstv %s1882_s4 }
  0x6a   :  { %373 = vrot.lane.b32.xlu1 %v352_v33, %s1531_s21  ;;  %3070 = sst [smem:[#allocation67_spill]] %s1901_s28  ;;  %s1929_s0 = sld [smem:[#allocation4 + $0x5a]] }
  0x6b   :  { %s3072_s17 = sld [smem:[#allocation63_spill]]  ;;  %s1936_s19 = sld [smem:[#allocation4 + $0x5f]] }
  0x6c   :  { %379 = vrot.lane.b32.xlu0 %v351_v32, %s1532_s22  ;;  %s1938_s29 = sld [smem:[#allocation4 + $0x18]]  ;;  %s3073_s30 = sld [smem:[#allocation62_spill]] }
  0x6d   :  { %s1945_s1 = sld [smem:[#allocation4 + $0x2a]]  ;;  %s1953_s15 = sld [smem:[#allocation4 + $0x2c]] }
  0x6e   :  { %381 = vrot.lane.b32.xlu1 %v352_v33, %s1532_s22  ;;  %s1956_s11 = sld [smem:[#allocation4 + $0x2e]]  ;;  %s1962_s3 = sld [smem:[#allocation4 + $0x2f]] }
  0x6f   :  { %s1964_s9 = sld [smem:[#allocation4 + $0x60]]  ;;  %s1975_s7 = sld [smem:[#allocation4 + $0x61]] }
  0x70   :  { %210 = vrot.lane.b32.xlu0 %v206_v30, %s1530_s2  ;;  %s1973_s4 = sld [smem:[#allocation4 + $0x30]]  ;;  %s1993_s6 = sld [smem:[#allocation4 + $0x15]] }
  0x71   :  { %s1988_s27 = sld [smem:[#allocation4 + $0x48]] }
  0x72   :  { %389 = vrot.lane.b32.xlu1 %v352_v33, %s1533_s23  ;;  %v2967_v18 = vstv %s3073_s30  ;;  %v813_v39 = vstv %s1938_s29 }
  0x74   :  { %256 = vrot.lane.b32.xlu0 %v206_v30, %s1531_s21 }
  0x75   :  { %3076 = sst [smem:[#allocation63_spill]] %s1964_s9  ;;  %s3101_s9 = sld [smem:[#allocation22_spill]] }
  0x76   :  { %236 = vrot.lane.b32.xlu1 %v207_v34, %s1523_s5  ;;  %s1648_s5 = sld [smem:[#allocation4 + $0x35]]  ;;  %3078 = sst [smem:[#allocation62_spill]] %s1975_s7 }
  0x77   :  { %3081 = sst [smem:[#allocation72_spill]] %s1988_s27  ;;  %s3100_s7 = sld [smem:[#allocation20_spill]] }
  0x78   :  { %278 = vrot.lane.b32.xlu0 %v206_v30, %s1532_s22  ;;  %3082 = sst [smem:[#allocation73_spill]] %s1993_s6  ;;  %s3211_s6 = sld [smem:[#allocation56_spill]] }
  0x79   :  { %s3102_s27 = sld [smem:[#allocation28_spill]] }
  0x7a   :  { %258 = vrot.lane.b32.xlu1 %v207_v34, %s1531_s21  ;;  %s1685_s21 = sld [smem:[#allocation4 + $0x12]] }
  0x7c   :  { %300 = vrot.lane.b32.xlu0 %v206_v30, %s1533_s23  ;;  %3015 = sst [smem:[#allocation21_spill]] %s1648_s5 }
  0x7d   :  { %s1791_s5 = sld [smem:[#allocation4 + $0x55]]  ;;  %v3105_v38 = vstv %s3100_s7 }
  0x7e   :  { %280 = vrot.lane.b32.xlu1 %v207_v34, %s1532_s22  ;;  %s1687_s22 = sld [smem:[#allocation4 + $0x4e]] }
  0x80   :  { %212 = vrot.lane.b32.xlu0 %v207_v34, %s1530_s2  ;;  %s1683_s2 = sld [smem:[#allocation4 + $0x3c]] }
  0x81   :  { %3030 = sst [smem:[#allocation36_spill]] %s1685_s21  ;;  %s1899_s21 = sld [smem:[#allocation4 + $0x53]] }
  0x82   :  { %302 = vrot.lane.b32.xlu1 %v207_v34, %s1533_s23 }
  0x83   :  { %3049 = sst [smem:[#allocation55_spill]] %s1791_s5  ;;  %s1947_s5 = sld [smem:[#allocation4 + $0x2b]] }
  0x84   :  { %387 = vrot.lane.b32.xlu0 %v351_v32, %s1533_s23  ;;  %3031 = sst [smem:[#allocation37_spill]] %s1687_s22  ;;  %s1695_s23 = sld [smem:[#allocation4 + $0x36]] }
  0x85   :  { %s1709_s22 = sld [smem:[#allocation4 + $0x7]]  ;;  %s3121_s29 = sld [smem:[#allocation37_spill]] }
  0x86   :  { %324 = vrot.lane.b32.xlu1 %v207_v34, %s1534_s24  ;;  %3029 = sst [smem:[#allocation35_spill]] %s1683_s2  ;;  %v1845_v34 = vrot.slane %v330_v21, %v1690_v37  ;;  %s1861_s2 = sld [smem:[#allocation4 + $0x25]]  ;;  %v1186_v21 = vmul.f32 %v1185_v41, %v1629_v31  ;;  %v829_v41 = vstv %s1890_s20 }
  0x87   :  { %s1986_s20 = sld [smem:[#allocation4 + $0x47]]  ;;  %v830_v28 = vmul.f32 %v829_v41, %v1629_v31  ;;  %v814_v41 = vmul.f32 %v813_v39, %v1624_v29  ;;  %s3115_s28 = sld [smem:[#allocation35_spill]] }
  0x88   :  { %322 = vrot.lane.b32.xlu0 %v206_v30, %s1534_s24  ;;  %v1835_v30 = vrot.slane %v688_v11, %v1612_v54  ;;  %v1971_v14 = vrot.slane %v1186_v21, %v1612_v54  ;;  %v1170_v21 = vmul.f32 %v1169_v27, %v1624_v29 }
  0x89   :  { %v2019_v5 = vrot.slane %v830_v28, %v1612_v54 }
  0x8a   :  { %397 = vrot.lane.b32.xlu1 %v352_v33, %s1534_s24  ;;  %3034 = sst [smem:[#allocation40_spill]] %s1695_s23  ;;  %s1711_s23 = sld [smem:[#allocation4 + $0x51]]  ;;  %3077 = vst [vmem:[#allocation69_spill] sm:$0xff] %v1971_v14  ;;  %v2012_v11 = vrot.slane %v1170_v21, %v1612_v54 }
  0x8b   :  { %3038 = sst [smem:[#allocation44_spill]] %s1709_s22  ;;  %s1753_s22 = sld [smem:[#allocation4 + $0x54]]  ;;  %3085 = vst [vmem:[#allocation76_spill] sm:$0xff] %v2019_v5 }
  0x8c   :  { %395 = vrot.lane.b32.xlu0 %v351_v32, %s1534_s24  ;;  %s1697_s24 = sld [smem:[#allocation4 + $0x4f]]  ;;  %3084 = vst [vmem:[#allocation75_spill] sm:$0xff] %v2012_v11 }
  0x8d   :  { %3063 = sst [smem:[#allocation65_spill]] %s1861_s2  ;;  %s1996_s2 = sld [smem:[#allocation4 + $0x4a]] }
  0x8e   :  { %3080 = sst [smem:[#allocation71_spill]] %s1986_s20  ;;  %s3209_s20 = sld [smem:[#allocation53_spill]] }
  0x90   :  { %3039 = sst [smem:[#allocation45_spill]] %s1711_s23  ;;  %s1739_s23 = sld [smem:[#allocation4 + $0x14]] }
  0x91   :  { %v1015_v46 = vstv %s1753_s22  ;;  %s3112_s22 = sld [smem:[#allocation23_spill]]  ;;  %s3123_s7 = sld [smem:[#allocation45_spill]] }
  0x93   :  { %3083 = sst [smem:[#allocation74_spill]] %s1996_s2 }
  0x94   :  { %s3109_s2 = sld [smem:[#allocation21_spill]] }
  0x96   :  { %3042 = sst [smem:[#allocation48_spill]] %s1739_s23  ;;  %s1757_s23 = sld [smem:[#allocation4 + $0x37]] }
  0x9c   :  { %3044 = sst [smem:[#allocation50_spill]] %s1757_s23  ;;  %s1919_s23 = sld [smem:[#allocation4 + $0x59]] }
  0xcf   :  { %v1977_v63 = vpop.permute.xlu1 %234 }
  0xd2   :  { %v356_v10 = vpop.permute.xlu0 %355 }
  0xd4   :  { %v358_v9 = vpop.permute.xlu1 %357 }
  0xd5   :  { %v359_v21 = vsel %vm216_vm5, %v356_v10, %v358_v9  ;;  %v360_v26 = vsel %vm216_vm5, %v358_v9, %v356_v10  ;;  %v2056_v10 = vrot.slane %v814_v41, %v1612_v54 }
  0xd6   :  { %v364_v6 = vpop.permute.xlu0 %363  ;;  %v2032_v15 = vmul.f32 %v360_v26, %v1717_v44  ;;  %v2035_v31 = vmul.f32 %v359_v21, %v1720_v45 }
  0xd7   :  { %3093 = vst [vmem:[#allocation79_spill] sm:$0xff] %v2056_v10 }
  0xd8   :  { %3088 = vst [vmem:[#allocation77_spill] sm:$0xff] %v2032_v15  ;;  %3089 = vst [vmem:[#allocation78_spill] sm:$0xff] %v2035_v31  ;;  %v366_v27 = vpop.permute.xlu1 %365  ;;  %v410_v21 = vmul.f32 %v408_v53, %v2035_v31  ;;  %v409_v28 = vmul.f32 %v408_v53, %v2032_v15  ;;  %v661_v39 = vmul.f32 %v659_v55, %v2035_v31 }
  0xd9   :  { %v367_v9 = vsel %vm238_vm6, %v364_v6, %v366_v27  ;;  %v368_v26 = vsel %vm238_vm6, %v366_v27, %v364_v6  ;;  %v660_v23 = vmul.f32 %v659_v55, %v2032_v15  ;;  %v535_v53 = vmul.f32 %v533_v8, %v2035_v31 }
  0xda   :  { %v372_v29 = vpop.permute.xlu0 %371  ;;  %v2069_v54 = vmul.f32 %v368_v26, %v1728_v47  ;;  %v2072_v41 = vmul.f32 %v367_v9, %v1731_v2  ;;  %v534_v24 = vmul.f32 %v533_v8, %v2032_v15  ;;  %v2080_v6 = vmul.f32 %v889_v17, %v2035_v31 }
  0xdb   :  { %v2085_v55 = vmul.f32 %v889_v17, %v2032_v15  ;;  %v2090_v27 = vmul.f32 %v1015_v46, %v2035_v31  ;;  %v2095_v26 = vmul.f32 %v1015_v46, %v2032_v15  ;;  %v2100_v9 = vmul.f32 %v2967_v18, %v2035_v31 }
  0xdc   :  { %3096 = vst [vmem:[#allocation80_spill] sm:$0xff] %v2069_v54  ;;  %3097 = vst [vmem:[#allocation81_spill] sm:$0xff] %v2072_v41  ;;  %v374_v8 = vpop.permute.xlu1 %373  ;;  %v420_v59 = vmul.f32 %v418_v56, %v2072_v41  ;;  %v419_v17 = vmul.f32 %v418_v56, %v2069_v54  ;;  %v671_v36 = vmul.f32 %v669_v58, %v2072_v41 }
  0xdd   :  { %3098 = vst [vmem:[#allocation82_spill] sm:$0xff] %v2095_v26  ;;  %3099 = vst [vmem:[#allocation83_spill] sm:$0xff] %v2100_v9  ;;  %v670_v33 = vmul.f32 %v669_v58, %v2069_v54  ;;  %v375_v46 = vsel %vm260_vm7, %v372_v29, %v374_v8  ;;  %v376_v18 = vsel %vm260_vm7, %v374_v8, %v372_v29 }
  0xde   :  { %v545_v32 = vmul.f32 %v543_v12, %v2072_v41  ;;  %v544_v56 = vmul.f32 %v543_v12, %v2069_v54  ;;  %v380_v7 = vpop.permute.xlu0 %379  ;;  %v2125_v4 = vmul.f32 %v376_v18, %v1744_v51  ;;  %v2128_v58 = vmul.f32 %v375_v46, %v1747_v52 }
  0xdf   :  { %v422_v1 = vadd.f32 %v420_v59, %v410_v21  ;;  %v421_v0 = vadd.f32 %v419_v17, %v409_v28  ;;  %v673_v16 = vadd.f32 %v671_v36, %v661_v39  ;;  %v672_v29 = vadd.f32 %v670_v33, %v660_v23 }
  0xe0   :  { %3103 = vst [vmem:[#allocation84_spill] sm:$0xff] %v2125_v4  ;;  %3104 = vst [vmem:[#allocation85_spill] sm:$0xff] %v2128_v58  ;;  %v547_v8 = vadd.f32 %v545_v32, %v535_v53  ;;  %v546_v3 = vadd.f32 %v544_v56, %v534_v24  ;;  %v382_v62 = vpop.permute.xlu1 %381  ;;  %v432_v37 = vmul.f32 %v3105_v38, %v2128_v58  ;;  %v3106_v12 = vmov %v3105_v38 }
  0xe1   :  { %v431_v5 = vmul.f32 %v3106_v12, %v2125_v4  ;;  %v3107_v18 = vstv %s3101_s9  ;;  %v383_v36 = vsel %vm282_vm8, %v380_v7, %v382_v62  ;;  %v384_v24 = vsel %vm282_vm8, %v382_v62, %v380_v7  ;;  %s3129_s9 = sld [smem:[#allocation55_spill]] }
  0xe2   :  { %v683_v31 = vmul.f32 %v3107_v18, %v2128_v58  ;;  %v3108_v10 = vmov %v3107_v18  ;;  %v3110_v32 = vstv %s3102_s27  ;;  %v2152_v23 = vpop.permute.xlu0 %210  ;;  %v2155_v28 = vmul.f32 %v383_v36, %v1764_v60  ;;  %s3134_s27 = sld [smem:[#allocation27_spill]] }
  0xe3   :  { %v682_v46 = vmul.f32 %v3108_v10, %v2125_v4  ;;  %v557_v38 = vmul.f32 %v3110_v32, %v2128_v58  ;;  %v3111_v33 = vmov %v3110_v32  ;;  %v2158_v39 = vmul.f32 %v384_v24, %v1767_v61 }
  0xe4   :  { %v556_v59 = vmul.f32 %v3111_v33, %v2125_v4  ;;  %3113 = vst [vmem:[#allocation86_spill] sm:$0xff] %v2155_v28  ;;  %v434_v10 = vadd.f32 %v432_v37, %v422_v1  ;;  %v433_v21 = vadd.f32 %v431_v5, %v421_v0  ;;  %v685_v62 = vadd.f32 %v683_v31, %v673_v16  ;;  %v2160_v56 = vpop.permute.xlu1 %389 }
  0xe5   :  { %3114 = vst [vmem:[#allocation87_spill] sm:$0xff] %v2158_v39  ;;  %v684_v7 = vadd.f32 %v682_v46, %v672_v29  ;;  %v559_v53 = vadd.f32 %v557_v38, %v547_v8  ;;  %v3116_v12 = vcombine.high %v1734_v49, %v1734_v49  ;;  %v3117_v36 = vstv %s3109_s2  ;;  %s3136_s2 = sld [smem:[#allocation59_spill]] }
  0xe6   :  { %v558_v17 = vadd.f32 %v556_v59, %v546_v3  ;;  %v476_v32 = vmul.f32 %v3117_v36, %v2158_v39  ;;  %v465_v24 = vadd.f32 %v1734_v49, %v433_v21  ;;  %v3118_v37 = vmov %v3117_v36  ;;  %v257_v46 = vpop.permute.xlu0 %256 }
  0xe7   :  { %v466_v18 = vadd.f32 %v3116_v12, %v434_v10  ;;  %v475_v0 = vmul.f32 %v3118_v37, %v2155_v28  ;;  %v3119_v1 = vcombine.high %v1737_v50, %v1737_v50  ;;  %v3120_v3 = vstv %s3112_s22  ;;  %s3139_s22 = sld [smem:[#allocation47_spill]] }
  0xe8   :  { %v727_v5 = vmul.f32 %v3120_v3, %v2158_v39  ;;  %v716_v31 = vadd.f32 %v1737_v50, %v684_v7  ;;  %v3122_v29 = vmov %v3120_v3  ;;  %v3124_v38 = vcombine.high %v1797_v13, %v1797_v13 }
  0xe9   :  { %v717_v16 = vadd.f32 %v3119_v1, %v685_v62  ;;  %v726_v8 = vmul.f32 %v3122_v29, %v2155_v28  ;;  %v2182_v49 = vadd.f32 %v476_v32, %v466_v18  ;;  %v3125_v59 = vstv %s3115_s28  ;;  %v237_v32 = vpop.permute.xlu1 %236  ;;  %s3143_s28 = sld [smem:[#allocation52_spill]] }
  0xea   :  { %v591_v33 = vadd.f32 %v3124_v38, %v559_v53  ;;  %v601_v10 = vmul.f32 %v3125_v59, %v2158_v39  ;;  %v3126_v21 = vstv %s3073_s30  ;;  %v2195_v50 = vadd.f32 %v475_v0, %v465_v24  ;;  %s3132_s30 = sld [smem:[#allocation25_spill]] }
  0xeb   :  { %v2193_v62 = vmul.f32 %v3126_v21, %v2032_v15  ;;  %v2197_v7 = vadd.f32 %v727_v5, %v717_v16  ;;  %v590_v12 = vadd.f32 %v1797_v13, %v558_v17  ;;  %v3128_v18 = vmov %v3125_v59 }
  0xec   :  { %v600_v36 = vmul.f32 %v3128_v18, %v2155_v28  ;;  %v2203_v53 = vadd.f32 %v726_v8, %v716_v31  ;;  %v2205_v37 = vadd.f32 %v601_v10, %v591_v33  ;;  %v3130_v1 = vstv %s3121_s29  ;;  %v279_v8 = vpop.permute.xlu0 %278  ;;  %s3151_s29 = sld [smem:[#allocation31_spill]] }
  0xed   :  { %3127 = vst [vmem:[#allocation88_spill] sm:$0xff] %v2193_v62  ;;  %v901_v3 = vmul.f32 %v3130_v1, %v2072_v41  ;;  %v3131_v24 = vstv %s1697_s24  ;;  %v239_v13 = vsel %vm238_vm6, %v1977_v63, %v237_v32  ;;  %v240_v17 = vsel %vm238_vm6, %v237_v32, %v1977_v63  ;;  %s3149_s24 = sld [smem:[#allocation30_spill]] }
  0xee   :  { %v913_v0 = vmul.f32 %v3131_v24, %v2128_v58  ;;  %v3133_v16 = vstv %s3123_s7  ;;  %v3135_v31 = vmov %v3130_v1  ;;  %v2228_v38 = vmul.f32 %v1728_v47, %v240_v17  ;;  %s3156_s7 = sld [smem:[#allocation49_spill]] }
  0xef   :  { %v2222_v5 = vmul.f32 %v3133_v16, %v2158_v39  ;;  %v900_v29 = vmul.f32 %v3135_v31, %v2069_v54  ;;  %v2231_v33 = vmul.f32 %v1731_v2, %v239_v13  ;;  %v2233_v59 = vadd.f32 %v600_v36, %v590_v12 }
  0xf0   :  { %3137 = vst [vmem:[#allocation89_spill] sm:$0xff] %v2228_v38  ;;  %v903_v63 = vadd.f32 %v901_v3, %v2080_v6  ;;  %v3140_v21 = vmov %v3131_v24  ;;  %v3141_v32 = vmov %v3133_v16  ;;  %v3142_v47 = vstv %s3129_s9  ;;  %v259_v24 = vpop.permute.xlu1 %258 }
  0xf1   :  { %3138 = vst [vmem:[#allocation90_spill] sm:$0xff] %v2231_v33  ;;  %v902_v10 = vadd.f32 %v900_v29, %v2085_v55  ;;  %v912_v18 = vmul.f32 %v3140_v21, %v2125_v4  ;;  %v2243_v1 = vmul.f32 %v3141_v32, %v2155_v28  ;;  %v1027_v2 = vmul.f32 %v3142_v47, %v2072_v41 }
  0xf2   :  { %v3144_v6 = vstv %s3132_s30  ;;  %v3146_v3 = vstv %s3134_s27  ;;  %v3147_v17 = vstv %s3136_s2  ;;  %v261_v31 = vsel %vm260_vm7, %v257_v46, %v259_v24  ;;  %s3160_s30 = sld [smem:[#allocation57_spill]]  ;;  %s3166_s27 = sld [smem:[#allocation34_spill]] }
  0xf3   :  { %v414_v12 = vmul.f32 %v3144_v6, %v2231_v33  ;;  %v3145_v55 = vmov %v3144_v6  ;;  %v665_v13 = vmul.f32 %v3146_v3, %v2231_v33  ;;  %v2261_v16 = vmul.f32 %v3147_v17, %v2128_v58 }
  0xf4   :  { %v413_v36 = vmul.f32 %v3145_v55, %v2228_v38  ;;  %v262_v29 = vsel %vm260_vm7, %v259_v24, %v257_v46  ;;  %v3150_v21 = vmov %v3146_v3  ;;  %v3152_v47 = vstv %s3139_s22  ;;  %v301_v55 = vpop.permute.xlu0 %300  ;;  %s3169_s22 = sld [smem:[#allocation36_spill]] }
  0xf5   :  { %3148 = vst [vmem:[#allocation91_spill] sm:$0xff] %v2261_v16  ;;  %v2270_v32 = vmul.f32 %v3150_v21, %v2228_v38  ;;  %v2275_v6 = vmul.f32 %v3152_v47, %v2231_v33  ;;  %v2278_v3 = vmul.f32 %v1744_v51, %v262_v29  ;;  %v2281_v17 = vmul.f32 %v1747_v52, %v261_v31  ;;  %v281_v31 = vpop.permute.xlu1 %280 }
  0xf6   :  { %v3155_v15 = vmov %v3152_v47  ;;  %v3157_v24 = vstv %s3143_s28  ;;  %v915_v62 = vadd.f32 %v913_v0, %v903_v63  ;;  %v914_v51 = vadd.f32 %v912_v18, %v902_v10  ;;  %s3172_s28 = sld [smem:[#allocation32_spill]] }
  0xf7   :  { %3153 = vst [vmem:[#allocation92_spill] sm:$0xff] %v2278_v3  ;;  %3154 = vst [vmem:[#allocation93_spill] sm:$0xff] %v2281_v17  ;;  %v2286_v46 = vmul.f32 %v3155_v15, %v2228_v38  ;;  %v2291_v21 = vmul.f32 %v3157_v24, %v2231_v33  ;;  %v3158_v47 = vmov %v3157_v24  ;;  %v3159_v29 = vstv %s3072_s17 }
  0xf8   :  { %v2296_v14 = vmul.f32 %v3158_v47, %v2228_v38  ;;  %v2301_v52 = vmul.f32 %v3159_v29, %v2231_v33  ;;  %v3162_v15 = vstv %s3149_s24  ;;  %v3164_v63 = vstv %s3151_s29  ;;  %v213_v41 = vpop.permute.xlu0 %212  ;;  %s3175_s24 = sld [smem:[#allocation33_spill]]  ;;  %s3179_s29 = sld [smem:[#allocation41_spill]] }
  0xf9   :  { %v426_v11 = vmul.f32 %v3162_v15, %v2281_v17  ;;  %v3163_v24 = vmov %v3162_v15  ;;  %v677_v47 = vmul.f32 %v3164_v63, %v2281_v17  ;;  %v2314_v10 = vadd.f32 %v1027_v2, %v2090_v27  ;;  %v303_v28 = vpop.permute.xlu1 %302 }
  0xfa   :  { %3161 = vst [vmem:[#allocation94_spill] sm:$0xff] %v2301_v52  ;;  %v425_v0 = vmul.f32 %v3163_v24, %v2278_v3  ;;  %v283_v18 = vsel %vm282_vm8, %v279_v8, %v281_v31  ;;  %v284_v29 = vsel %vm282_vm8, %v281_v31, %v279_v8  ;;  %v3167_v9 = vmov %v3164_v63 }
  0xfb   :  { %3165 = vst [vmem:[#allocation95_spill] sm:$0xff] %v2314_v10  ;;  %v2323_v15 = vmul.f32 %v3167_v9, %v2278_v3  ;;  %v3168_v58 = vstv %s3156_s7  ;;  %v2331_v27 = vmul.f32 %v1764_v60, %v283_v18  ;;  %v2334_v2 = vmul.f32 %v1767_v61, %v284_v29  ;;  %s3182_s7 = sld [smem:[#allocation40_spill]] }
  0xfc   :  { %v2328_v24 = vmul.f32 %v3168_v58, %v2281_v17  ;;  %v3170_v63 = vmov %v3168_v58  ;;  %v3171_v9 = vstv %s3160_s30  ;;  %v217_v58 = vsel %vm216_vm5, %v2152_v23, %v213_v41  ;;  %s3184_s30 = sld [smem:[#allocation43_spill]] }
  0xfd   :  { %v2339_v8 = vmul.f32 %v3170_v63, %v2278_v3  ;;  %v2344_v31 = vmul.f32 %v3171_v9, %v2281_v17  ;;  %v218_v60 = vsel %vm216_vm5, %v213_v41, %v2152_v23  ;;  %v3173_v61 = vcombine.high %v1859_v42, %v1859_v42  ;;  %v325_v38 = vpop.permute.xlu1 %324 }
  0xfe   :  { %v3174_v29 = vmov %v3171_v9  ;;  %v2363_v9 = vmul.f32 %v1717_v44, %v218_v60  ;;  %v2366_v33 = vmul.f32 %v1720_v45, %v217_v58  ;;  %v3176_v41 = vstv %s3166_s27  ;;  %s3189_s27 = sld [smem:[#allocation42_spill]] }
  0xff   :  { %v2355_v18 = vadd.f32 %v3173_v61, %v915_v62  ;;  %v2360_v63 = vmul.f32 %v3174_v29, %v2278_v3  ;;  %v470_v23 = vmul.f32 %v3176_v41, %v2334_v2  ;;  %v2372_v26 = vadd.f32 %v1859_v42, %v914_v51  ;;  %v388_v29 = vpop.permute.xlu0 %387 }
 0x100   :  { %v305_v62 = vsel %vm304_vm9, %v301_v55, %v303_v28  ;;  %v306_v61 = vsel %vm304_vm9, %v303_v28, %v301_v55  ;;  %v3177_v44 = vmov %v3176_v41  ;;  %v3178_v45 = vstv %s3169_s22 }
 0x101   :  { %v469_v60 = vmul.f32 %v3177_v44, %v2331_v27  ;;  %v721_v58 = vmul.f32 %v3178_v45, %v2334_v2  ;;  %v2385_v41 = vmul.f32 %v1812_v19, %v305_v62  ;;  %v2388_v42 = vmul.f32 %v1815_v20, %v306_v61 }
 0x102   :  { %v3180_v51 = vstv %s3172_s28  ;;  %v391_v44 = vsel %vm304_vm9, %v388_v29, %v2160_v56  ;;  %v392_v62 = vsel %vm304_vm9, %v2160_v56, %v388_v29  ;;  %v3183_v45 = vstv %s3175_s24  ;;  %s3194_s28 = sld [smem:[#allocation48_spill]]  ;;  %s3200_s24 = sld [smem:[#allocation50_spill]] }
 0x103   :  { %v406_v3 = vmul.f32 %v3180_v51, %v2366_v33  ;;  %v3181_v28 = vmov %v3180_v51  ;;  %v657_v61 = vmul.f32 %v3183_v45, %v2366_v33  ;;  %v3185_v4 = vstv %s3169_s22  ;;  %v323_v10 = vpop.permute.xlu0 %322  ;;  %s3193_s22 = sld [smem:[#allocation46_spill]] }
 0x104   :  { %v405_v55 = vmul.f32 %v3181_v28, %v2363_v9  ;;  %v2408_v51 = vmul.f32 %v3185_v4, %v2331_v27  ;;  %v2411_v28 = vmul.f32 %v391_v44, %v1812_v19  ;;  %v2414_v54 = vmul.f32 %v392_v62, %v1815_v20 }
 0x105   :  { %v416_v22 = vadd.f32 %v414_v12, %v406_v3  ;;  %v3186_v39 = vmov %v3183_v45  ;;  %v3187_v56 = vstv %s3179_s29  ;;  %v667_v16 = vadd.f32 %v665_v13, %v657_v61  ;;  %s3202_s29 = sld [smem:[#allocation51_spill]] }
 0x106   :  { %v656_v35 = vmul.f32 %v3186_v39, %v2363_v9  ;;  %v482_v29 = vmul.f32 %v3187_v56, %v2388_v42  ;;  %v415_v52 = vadd.f32 %v413_v36, %v405_v55  ;;  %v3188_v45 = vmov %v3187_v56  ;;  %v398_v56 = vpop.permute.xlu1 %397 }
 0x107   :  { %v481_v4 = vmul.f32 %v3188_v45, %v2385_v41  ;;  %v428_v19 = vadd.f32 %v426_v11, %v416_v22  ;;  %v3190_v44 = vstv %s3182_s7  ;;  %v3192_v3 = vstv %s3184_s30  ;;  %s2476_s7 = sld [smem:[#allocation4 + $0x16]] }
 0x108   :  { %v488_v20 = vmul.f32 %v3190_v44, %v2414_v54  ;;  %v3191_v62 = vmov %v3190_v44  ;;  %v733_v39 = vmul.f32 %v3192_v3, %v2388_v42  ;;  %v327_v36 = vsel %vm326_vm10, %v323_v10, %v325_v38 }
 0x109   :  { %v487_v12 = vmul.f32 %v3191_v62, %v2411_v28  ;;  %v328_v55 = vsel %vm326_vm10, %v325_v38, %v323_v10  ;;  %v427_v13 = vadd.f32 %v425_v0, %v415_v52  ;;  %v679_v22 = vadd.f32 %v677_v47, %v667_v16  ;;  %v396_v47 = vpop.permute.xlu0 %395 }
 0x10a   :  { %v2439_v11 = vmul.f32 %v1845_v34, %v327_v36  ;;  %v2442_v61 = vmul.f32 %v1855_v40, %v328_v55  ;;  %v3195_v45 = vcombine.high %v1825_v25, %v1825_v25  ;;  %v3196_v62 = vstv %s3189_s27 }
 0x10b   :  { %v739_v3 = vmul.f32 %v3196_v62, %v2414_v54  ;;  %v490_v17 = vadd.f32 %v488_v20, %v2182_v49  ;;  %v449_v38 = vadd.f32 %v1825_v25, %v427_v13  ;;  %v489_v16 = vadd.f32 %v487_v12, %v2195_v50 }
 0x10c   :  { %v450_v44 = vadd.f32 %v3195_v45, %v428_v19  ;;  %v3197_v52 = vcombine.high %v1835_v30, %v1835_v30  ;;  %v3198_v36 = vstv %s3193_s22  ;;  %v3201_v49 = vstv %s3194_s28  ;;  %s3205_s22 = sld [smem:[#allocation44_spill]] }
 0x10d   :  { %v494_v55 = vmul.f32 %v3198_v36, %v2442_v61  ;;  %v3199_v19 = vmov %v3198_v36  ;;  %v745_v25 = vmul.f32 %v3201_v49, %v2442_v61  ;;  %v399_v50 = vsel %vm326_vm10, %v396_v47, %v398_v56 }
 0x10e   :  { %v701_v0 = vadd.f32 %v3197_v52, %v679_v22  ;;  %v472_v10 = vadd.f32 %v470_v23, %v450_v44  ;;  %v493_v45 = vmul.f32 %v3199_v19, %v2439_v11  ;;  %v400_v23 = vsel %vm326_vm10, %v398_v56, %v396_v47 }
 0x10f   :  { %v471_v20 = vadd.f32 %v469_v60, %v449_v38  ;;  %v2470_v13 = vmul.f32 %v399_v50, %v1845_v34  ;;  %v2473_v22 = vmul.f32 %v400_v23, %v1855_v40  ;;  %v666_v62 = vadd.f32 %v2270_v32, %v656_v35 }
 0x110   :  { %v723_v12 = vadd.f32 %v721_v58, %v701_v0  ;;  %v484_v44 = vadd.f32 %v482_v29, %v472_v10  ;;  %v741_v19 = vadd.f32 %v739_v3, %v2197_v7  ;;  %v3203_v56 = vstv %s3189_s27  ;;  %s3210_s27 = sld [smem:[#allocation58_spill]] }
 0x111   :  { %v483_v52 = vadd.f32 %v481_v4, %v471_v20  ;;  %v738_v60 = vmul.f32 %v3203_v56, %v2411_v28  ;;  %v3204_v34 = vstv %s3200_s24  ;;  %v3207_v35 = vstv %s3202_s29  ;;  %s3221_s24 = sld [smem:[#allocation54_spill]]  ;;  %s3224_s29 = sld [smem:[#allocation61_spill]] }
 0x112   :  { %v735_v36 = vadd.f32 %v733_v39, %v723_v12  ;;  %v500_v58 = vmul.f32 %v3204_v34, %v2473_v22  ;;  %v3206_v40 = vmov %v3204_v34  ;;  %v751_v32 = vmul.f32 %v3207_v35, %v2473_v22 }
 0x113   :  { %v499_v29 = vmul.f32 %v3206_v40, %v2470_v13  ;;  %v3208_v4 = vstv %s3184_s30  ;;  %v496_v38 = vadd.f32 %v494_v55, %v484_v44  ;;  %v495_v7 = vadd.f32 %v493_v45, %v483_v52  ;;  %s3216_s30 = sld [smem:[#allocation60_spill]] }
 0x114   :  { %v732_v39 = vmul.f32 %v3208_v4, %v2385_v41  ;;  %v747_v3 = vadd.f32 %v745_v25, %v735_v36  ;;  %v678_v0 = vadd.f32 %v2323_v15, %v666_v62  ;;  %v502_v47 = vadd.f32 %v500_v58, %v490_v17 }
 0x115   :  { %v501_v10 = vadd.f32 %v499_v29, %v489_v16  ;;  %v753_v49 = vadd.f32 %v751_v32, %v741_v19  ;;  %v740_v50 = vadd.f32 %v738_v60, %v2203_v53  ;;  %v3212_v20 = vstv %s3194_s28  ;;  %s1535_s28 = smov 48  }
 0x116   :  { %v700_v23 = vadd.f32 %v1835_v30, %v678_v0  ;;  %v744_v12 = vmul.f32 %v3212_v20, %v2439_v11  ;;  %v3213_v56 = vmov %v3207_v35  ;;  %v3214_v45 = vstv %s3205_s22 }
 0x117   :  { %v750_v55 = vmul.f32 %v3213_v56, %v2470_v13  ;;  %v531_v15 = vmul.f32 %v3214_v45, %v2366_v33  ;;  %v504_v25 = vadd.f32 %v502_v47, %v496_v38  ;;  %v503_v17 = vadd.f32 %v501_v10, %v495_v7 }
 0x118   :  { %v755_v16 = vadd.f32 %v753_v49, %v747_v3  ;;  %v3215_v44 = vstv %s3209_s20  ;;  %v722_v30 = vadd.f32 %v2408_v51, %v700_v23  ;;  %v3217_v52 = vstv %s3210_s27  ;;  %s1536_s20 = smov 16  }
 0x119   :  { %v595_v53 = vmul.f32 %v3215_v44, %v2334_v2  ;;  %v541_v62 = vadd.f32 %v2275_v6, %v531_v15  ;;  %v607_v36 = vmul.f32 %v3217_v52, %v2388_v42  ;;  %v3218_v19 = vstv %s3211_s6  ;;  %507 = vrot.lane.b32.xlu1 %v504_v25, %s1535_s28  ;;  %505 = vrot.lane.b32.xlu0 %v503_v17, %s1535_s28  ;;  %s3238_s6 = sld [smem:[#allocation65_spill]] }
 0x11a   :  { %v613_v60 = vmul.f32 %v3218_v19, %v2414_v54  ;;  %v752_v34 = vadd.f32 %v750_v55, %v740_v50  ;;  %v3219_v58 = vstv %s1829_s13  ;;  %v3220_v40 = vmov %v3214_v45  ;;  %s3243_s13 = sld [smem:[#allocation64_spill]] }
 0x11b   :  { %v625_v51 = vmul.f32 %v3219_v58, %v2473_v22  ;;  %v530_v6 = vmul.f32 %v3220_v40, %v2363_v9  ;;  %v789_v29 = vstv %s2476_s7  ;;  %v734_v35 = vadd.f32 %v732_v39, %v722_v30 }
 0x11c   :  { %v553_v32 = vadd.f32 %v2328_v24, %v541_v62  ;;  %v615_v4 = vadd.f32 %v613_v60, %v2205_v37  ;;  %v3222_v38 = vstv %s3216_s30  ;;  %v3223_v0 = vmov %v3215_v44 }
 0x11d   :  { %v619_v7 = vmul.f32 %v3222_v38, %v2442_v61  ;;  %v540_v3 = vadd.f32 %v2286_v46, %v530_v6  ;;  %v594_v47 = vmul.f32 %v3223_v0, %v2331_v27  ;;  %v3225_v10 = vmov %v3217_v52  ;;  %758 = vrot.lane.b32.xlu1 %v755_v16, %s1536_s20 }
 0x11e   :  { %v606_v49 = vmul.f32 %v3225_v10, %v2385_v41  ;;  %v3226_v50 = vmov %v3218_v19  ;;  %v746_v23 = vadd.f32 %v744_v12, %v734_v35  ;;  %v3227_v24 = vcombine.high %v1895_v57, %v1895_v57 }
 0x11f   :  { %v612_v39 = vmul.f32 %v3226_v50, %v2411_v28  ;;  %v3228_v20 = vmov %v3222_v38  ;;  %v3229_v56 = vmov %v3219_v58  ;;  %v627_v45 = vadd.f32 %v625_v51, %v615_v4 }
 0x120   :  { %v575_v37 = vadd.f32 %v3227_v24, %v553_v32  ;;  %v618_v46 = vmul.f32 %v3228_v20, %v2439_v11  ;;  %v624_v55 = vmul.f32 %v3229_v56, %v2470_v13  ;;  %v552_v15 = vadd.f32 %v2339_v8, %v540_v3 }
 0x121   :  { %v614_v12 = vadd.f32 %v612_v39, %v2233_v59  ;;  %v3230_v25 = vstv %s3221_s24  ;;  %v754_v44 = vadd.f32 %v752_v34, %v746_v23  ;;  %v3231_v62 = vstv %s3224_s29 }
 0x122   :  { %v887_v17 = vmul.f32 %v3230_v25, %v2366_v33  ;;  %v597_v30 = vadd.f32 %v595_v53, %v575_v37  ;;  %v951_v52 = vmul.f32 %v3231_v62, %v2334_v2  ;;  %v959_v19 = vadd.f32 %v2222_v5, %v2355_v18 }
 0x123   :  { %v574_v16 = vadd.f32 %v1895_v57, %v552_v15  ;;  %v3232_v8 = vstv %s1880_s26  ;;  %v3233_v58 = vstv %s1871_s14  ;;  %756 = vrot.lane.b32.xlu0 %v754_v44, %s1536_s20  ;;  %v626_v34 = vadd.f32 %v624_v55, %v614_v12  ;;  %s3246_s26 = smov 32   ;;  %s1537_s14 = smov 112  }
 0x124   :  { %v897_v60 = vadd.f32 %v2291_v21, %v887_v17  ;;  %v963_v59 = vmul.f32 %v3232_v8, %v2388_v42  ;;  %v969_v51 = vmul.f32 %v3233_v58, %v2414_v54  ;;  %v609_v53 = vadd.f32 %v607_v36, %v597_v30 }
 0x125   :  { %v3234_v40 = vstv %s1899_s21  ;;  %v3235_v5 = vmov %v3230_v25  ;;  %v596_v57 = vadd.f32 %v594_v47, %v574_v16  ;;  %v3236_v32 = vstv %s1887_s16  ;;  %s3273_s16 = sld [smem:[#allocation66_spill]]  ;;  %s3289_s21 = sld [smem:[#allocation63_spill]] }
 0x126   :  { %v981_v6 = vmul.f32 %v3234_v40, %v2473_v22  ;;  %v886_v18 = vmul.f32 %v3235_v5, %v2363_v9  ;;  %v909_v21 = vadd.f32 %v2344_v31, %v897_v60  ;;  %v971_v35 = vadd.f32 %v969_v51, %v959_v19  ;;  %v3251_v60 = vld [vmem:[#allocation94_spill] sm:$0xff] }
 0x127   :  { %v975_v4 = vmul.f32 %v3236_v32, %v2442_v61  ;;  %v621_v38 = vadd.f32 %v619_v7, %v609_v53  ;;  %v3237_v3 = vmov %v3231_v62  ;;  %v958_v10 = vadd.f32 %v2243_v1, %v2372_v26  ;;  %v3249_v62 = vld [vmem:[#allocation95_spill] sm:$0xff] }
 0x128   :  { %v896_v36 = vadd.f32 %v2296_v14, %v886_v18  ;;  %v950_v0 = vmul.f32 %v3237_v3, %v2331_v27  ;;  %v608_v50 = vadd.f32 %v606_v49, %v596_v57  ;;  %v3239_v31 = vcombine.high %v1914_v48, %v1914_v48  ;;  %v3255_v18 = vld [vmem:[#allocation87_spill] sm:$0xff] }
 0x129   :  { %v3240_v39 = vmov %v3232_v8  ;;  %v3241_v24 = vmov %v3233_v58  ;;  %v629_v37 = vadd.f32 %v627_v45, %v621_v38  ;;  %v983_v14 = vadd.f32 %v981_v6, %v971_v35 }
 0x12a   :  { %v931_v47 = vadd.f32 %v3239_v31, %v909_v21  ;;  %v962_v23 = vmul.f32 %v3240_v39, %v2385_v41  ;;  %v968_v7 = vmul.f32 %v3241_v24, %v2411_v28  ;;  %v908_v20 = vadd.f32 %v2360_v63, %v896_v36  ;;  %v3247_v63 = vld [vmem:[#allocation93_spill] sm:$0xff]  ;;  %v3261_v24 = vld [vmem:[#allocation70_spill] sm:$0xff] }
 0x12b   :  { %v3242_v56 = vmov %v3234_v40  ;;  %v620_v1 = vadd.f32 %v618_v46, %v608_v50  ;;  %v3244_v55 = vmov %v3236_v32  ;;  %v3245_v12 = vstv %s1873_s18  ;;  %632 = vrot.lane.b32.xlu1 %v629_v37, %s3246_s26  ;;  %v3250_v46 = vld [vmem:[#allocation91_spill] sm:$0xff]  ;;  %v3253_v40 = vld [vmem:[#allocation68_spill] sm:$0xff]  ;;  %v3263_v37 = vld [vmem:[#allocation89_spill] sm:$0xff]  ;;  %s2687_s18 = sld [smem:[#allocation4 + $0x19]] }
 0x12c   :  { %v980_v26 = vmul.f32 %v3242_v56, %v2470_v13  ;;  %v953_v49 = vadd.f32 %v951_v52, %v931_v47  ;;  %v974_v15 = vmul.f32 %v3244_v55, %v2439_v11  ;;  %v1013_v25 = vmul.f32 %v3245_v12, %v2366_v33 }
 0x12d   :  { %v930_v45 = vadd.f32 %v1914_v48, %v908_v20  ;;  %v970_v17 = vadd.f32 %v968_v7, %v958_v10  ;;  %v3248_v44 = vstv %s3238_s6  ;;  %v1041_v19 = vadd.f32 %v3250_v46, %v3249_v62  ;;  %v3270_v62 = vld [vmem:[#allocation82_spill] sm:$0xff] }
 0x12e   :  { %v1033_v30 = vmul.f32 %v3248_v44, %v3247_v63  ;;  %v628_v52 = vadd.f32 %v626_v34, %v620_v1  ;;  %v965_v16 = vadd.f32 %v963_v59, %v953_v49  ;;  %v1023_v8 = vadd.f32 %v3251_v60, %v1013_v25 }
 0x12f   :  { %v3252_v58 = vstv %s1906_s12  ;;  %v952_v53 = vadd.f32 %v950_v0, %v930_v45  ;;  %v982_v48 = vadd.f32 %v980_v26, %v970_v17  ;;  %v3254_v6 = vcombine.high %v3253_v40, %v3253_v40  ;;  %v3265_v26 = vld [vmem:[#allocation80_spill] sm:$0xff]  ;;  %s1538_s12 = smov 96  }
 0x130   :  { %v1077_v51 = vmul.f32 %v3252_v58, %v2334_v2  ;;  %v3256_v57 = vstv %s3243_s13  ;;  %630 = vrot.lane.b32.xlu0 %v628_v52, %s3246_s26  ;;  %v977_v59 = vadd.f32 %v975_v4, %v965_v16  ;;  %v1035_v34 = vadd.f32 %v1033_v30, %v1023_v8  ;;  %v3268_v45 = vld [vmem:[#allocation84_spill] sm:$0xff] }
 0x131   :  { %v1073_v5 = vadd.f32 %v3254_v6, %v1041_v19  ;;  %v1083_v21 = vmul.f32 %v3256_v57, %v3255_v18  ;;  %v3257_v35 = vstv %s1917_s8  ;;  %v3258_v38 = vstv %s1919_s23  ;;  %v3271_v19 = vld [vmem:[#allocation92_spill] sm:$0xff]  ;;  %s2685_s8 = sld [smem:[#allocation4 + $0x17]]  ;;  %s2701_s23 = sld [smem:[#allocation4 + $0x1a]] }
 0x132   :  { %v1089_v32 = vmul.f32 %v3257_v35, %v2388_v42  ;;  %v1095_v36 = vmul.f32 %v3258_v38, %v2414_v54  ;;  %v964_v3 = vadd.f32 %v962_v23, %v952_v53  ;;  %v3259_v10 = vstv %s1929_s0  ;;  %v3275_v53 = vld [vmem:[#allocation86_spill] sm:$0xff] }
 0x133   :  { %v1085_v0 = vadd.f32 %v1083_v21, %v1073_v5  ;;  %v1107_v50 = vmul.f32 %v3259_v10, %v2473_v22  ;;  %v3260_v31 = vmov %v3245_v12  ;;  %v985_v39 = vadd.f32 %v983_v14, %v977_v59  ;;  %v3281_v10 = vld [vmem:[#allocation90_spill] sm:$0xff] }
 0x134   :  { %v1012_v47 = vmul.f32 %v3260_v31, %v2363_v9  ;;  %v3262_v4 = vcombine.high %v3261_v24, %v3261_v24  ;;  %v3264_v20 = vstv %s3072_s17  ;;  %v3266_v23 = vstv %s3129_s9  ;;  %s2718_s17 = sld [smem:[#allocation4 + $0x1b]]  ;;  %s2726_s9 = sld [smem:[#allocation4 + $0x4c]] }
 0x135   :  { %v1020_v56 = vmul.f32 %v3264_v20, %v3263_v37  ;;  %v1026_v1 = vmul.f32 %v3266_v23, %v3265_v26  ;;  %v976_v49 = vadd.f32 %v974_v15, %v964_v3  ;;  %v1097_v55 = vadd.f32 %v1095_v36, %v1085_v0  ;;  %988 = vrot.lane.b32.xlu1 %v985_v39, %s1537_s14 }
 0x136   :  { %v1057_v7 = vadd.f32 %v3262_v4, %v1035_v34  ;;  %v3267_v12 = vstv %s1927_s10  ;;  %v3269_v14 = vstv %s3136_s2  ;;  %v3272_v15 = vstv %s3238_s6  ;;  %v3283_v4 = vld [vmem:[#allocation81_spill] sm:$0xff]  ;;  %s3298_s10 = sld [smem:[#allocation62_spill]] }
 0x137   :  { %v1101_v25 = vmul.f32 %v3267_v12, %v2442_v61  ;;  %v1038_v17 = vmul.f32 %v3269_v14, %v3268_v45  ;;  %v1022_v30 = vadd.f32 %v1020_v56, %v1012_v47  ;;  %v1028_v46 = vadd.f32 %v1026_v1, %v3270_v62 }
 0x138   :  { %v1079_v44 = vadd.f32 %v1077_v51, %v1057_v7  ;;  %v1032_v52 = vmul.f32 %v3272_v15, %v3271_v19  ;;  %v984_v16 = vadd.f32 %v982_v48, %v976_v49  ;;  %v1109_v60 = vadd.f32 %v1107_v50, %v1097_v55 }
 0x139   :  { %v3274_v8 = vmov %v3252_v58  ;;  %v3276_v6 = vmov %v3256_v57  ;;  %v1040_v21 = vadd.f32 %v1038_v17, %v1028_v46  ;;  %v3277_v59 = vmov %v3257_v35 }
 0x13a   :  { %v1076_v58 = vmul.f32 %v3274_v8, %v2331_v27  ;;  %v1082_v5 = vmul.f32 %v3276_v6, %v3275_v53  ;;  %v1091_v57 = vadd.f32 %v1089_v32, %v1079_v44  ;;  %v1034_v51 = vadd.f32 %v1032_v52, %v1022_v30  ;;  %986 = vrot.lane.b32.xlu0 %v984_v16, %s1537_s14  ;;  %v3290_v44 = vld [vmem:[#allocation83_spill] sm:$0xff] }
 0x13b   :  { %v1088_v34 = vmul.f32 %v3277_v59, %v2385_v41  ;;  %v3278_v48 = vmov %v3258_v38  ;;  %v3279_v38 = vmov %v3267_v12  ;;  %v3280_v3 = vstv %s1945_s1  ;;  %v3287_v12 = vld [vmem:[#allocation85_spill] sm:$0xff] }
 0x13c   :  { %v1094_v35 = vmul.f32 %v3278_v48, %v2411_v28  ;;  %v1100_v36 = vmul.f32 %v3279_v38, %v2439_v11  ;;  %v1139_v0 = vmul.f32 %v3280_v3, %v2366_v33  ;;  %v3282_v50 = vstv %s1947_s5 }
 0x13d   :  { %v1147_v31 = vmul.f32 %v3282_v50, %v3281_v10  ;;  %v1103_v32 = vadd.f32 %v1101_v25, %v1091_v57  ;;  %v1056_v47 = vadd.f32 %v3261_v24, %v1034_v51  ;;  %v1072_v39 = vadd.f32 %v3253_v40, %v1040_v21  ;;  %v3295_v21 = vld [vmem:[#allocation75_spill] sm:$0xff] }
 0x13e   :  { %v3284_v7 = vstv %s3273_s16  ;;  %v3285_v56 = vstv %s1929_s0  ;;  %v3286_v49 = vstv %s1953_s15  ;;  %v3288_v14 = vstv %s1908_s25  ;;  %s2690_s0 = sld [smem:[#allocation4 + $0x4b]] }
 0x13f   :  { %v1153_v20 = vmul.f32 %v3284_v7, %v3283_v4  ;;  %v1106_v23 = vmul.f32 %v3285_v56, %v2470_v13  ;;  %v1149_v1 = vadd.f32 %v1147_v31, %v1139_v0  ;;  %v1159_v55 = vmul.f32 %v3286_v49, %v3247_v63 }
 0x140   :  { %v1165_v25 = vmul.f32 %v3288_v14, %v3287_v12  ;;  %v1111_v40 = vadd.f32 %v1109_v60, %v1103_v32  ;;  %v1078_v24 = vadd.f32 %v1076_v58, %v1056_v47  ;;  %v1084_v17 = vadd.f32 %v1082_v5, %v1072_v39  ;;  %v3301_v47 = vld [vmem:[#allocation69_spill] sm:$0xff] }
 0x141   :  { %v1155_v30 = vadd.f32 %v1153_v20, %v3290_v44  ;;  %v1161_v62 = vadd.f32 %v1159_v55, %v1149_v1  ;;  %v3291_v46 = vstv %s1956_s11  ;;  %v3292_v52 = vstv %s1936_s19  ;;  %v3307_v44 = vld [vmem:[#allocation88_spill] sm:$0xff] }
 0x142   :  { %v1203_v15 = vmul.f32 %v3291_v46, %v2334_v2  ;;  %v1209_v16 = vmul.f32 %v3292_v52, %v3255_v18  ;;  %v3293_v8 = vstv %s1962_s3  ;;  %1114 = vrot.lane.b32.xlu1 %v1111_v40, %s1538_s12  ;;  %v1090_v60 = vadd.f32 %v1088_v34, %v1078_v24 }
 0x143   :  { %v1215_v6 = vmul.f32 %v3293_v8, %v2388_v42  ;;  %v1096_v58 = vadd.f32 %v1094_v35, %v1084_v17  ;;  %v1167_v5 = vadd.f32 %v1165_v25, %v1155_v30  ;;  %v3294_v57 = vstv %s3289_s21 }
 0x144   :  { %v1221_v51 = vmul.f32 %v3294_v57, %v2414_v54  ;;  %v3296_v59 = vcombine.high %v3295_v21, %v3295_v21  ;;  %v3297_v38 = vstv %s1973_s4  ;;  %v3299_v0 = vstv %s1945_s1  ;;  %s3322_s1 = sld [smem:[#allocation72_spill]] }
 0x145   :  { %v1227_v3 = vmul.f32 %v3297_v38, %v2442_v61  ;;  %v1138_v50 = vmul.f32 %v3299_v0, %v2363_v9  ;;  %v3300_v34 = vstv %s1947_s5  ;;  %v1102_v35 = vadd.f32 %v1100_v36, %v1090_v60  ;;  %s3312_s5 = sld [smem:[#allocation67_spill]] }
 0x146   :  { %v1183_v48 = vadd.f32 %v3296_v59, %v1161_v62  ;;  %v1146_v31 = vmul.f32 %v3300_v34, %v3263_v37  ;;  %v1108_v32 = vadd.f32 %v1106_v23, %v1096_v58  ;;  %v3302_v39 = vcombine.high %v3301_v47, %v3301_v47 }
 0x147   :  { %v3303_v20 = vstv %s3273_s16  ;;  %v3304_v55 = vstv %s1953_s15  ;;  %v3305_v36 = vstv %s1908_s25  ;;  %v3306_v24 = vstv %s3298_s10  ;;  %s3311_s25 = sld [smem:[#allocation73_spill]]  ;;  %s1539_s15 = smov 80  }
 0x148   :  { %v1199_v7 = vadd.f32 %v3302_v39, %v1167_v5  ;;  %v1152_v56 = vmul.f32 %v3303_v20, %v3265_v26  ;;  %v1205_v1 = vadd.f32 %v1203_v15, %v1183_v48  ;;  %v1148_v49 = vadd.f32 %v1146_v31, %v1138_v50  ;;  %v3310_v48 = vld [vmem:[#allocation79_spill] sm:$0xff] }
 0x149   :  { %v1158_v14 = vmul.f32 %v3304_v55, %v3271_v19  ;;  %v1164_v23 = vmul.f32 %v3305_v36, %v3268_v45  ;;  %v1110_v25 = vadd.f32 %v1108_v32, %v1102_v35  ;;  %v1233_v17 = vmul.f32 %v3306_v24, %v2473_v22 }
 0x14a   :  { %v1211_v40 = vadd.f32 %v1209_v16, %v1199_v7  ;;  %v1154_v30 = vadd.f32 %v1152_v56, %v3307_v44  ;;  %v1217_v62 = vadd.f32 %v1215_v6, %v1205_v1  ;;  %v801_v15 = vstv %s2685_s8 }
 0x14b   :  { %v1160_v46 = vadd.f32 %v1158_v14, %v1148_v49  ;;  %v845_v52 = vstv %s2687_s18  ;;  %1112 = vrot.lane.b32.xlu0 %v1110_v25, %s1538_s12  ;;  %v3308_v58 = vstv %s1936_s19  ;;  %v863_v16 = vstv %s2690_s0  ;;  %s3327_s19 = sld [smem:[#allocation74_spill]] }
 0x14c   :  { %v1223_v8 = vadd.f32 %v1221_v51, %v1211_v40  ;;  %v1166_v60 = vadd.f32 %v1164_v23, %v1154_v30  ;;  %v1208_v5 = vmul.f32 %v3308_v58, %v3275_v53  ;;  %v3309_v6 = vstv %s1956_s11  ;;  %s3316_s11 = sld [smem:[#allocation71_spill]] }
 0x14d   :  { %v1182_v57 = vadd.f32 %v3295_v21, %v1160_v46  ;;  %v1202_v59 = vmul.f32 %v3309_v6, %v2331_v27  ;;  %v823_v38 = vcombine.high %v3310_v48, %v3310_v48  ;;  %v857_v0 = vstv %s2701_s23 }
 0x14e   :  { %v1229_v51 = vadd.f32 %v1227_v3, %v1217_v62  ;;  %v1235_v50 = vadd.f32 %v1233_v17, %v1223_v8  ;;  %v1198_v34 = vadd.f32 %v3301_v47, %v1166_v60  ;;  %v3313_v31 = vstv %s3289_s21  ;;  %v3323_v62 = vld [vmem:[#allocation78_spill] sm:$0xff] }
 0x14f   :  { %v1220_v35 = vmul.f32 %v3313_v31, %v2411_v28  ;;  %v1204_v32 = vadd.f32 %v1202_v59, %v1182_v57  ;;  %v3314_v21 = vstv %s1962_s3  ;;  %v3315_v7 = vstv %s1973_s4  ;;  %s1540_s3 = smov [#allocation11]  }
 0x150   :  { %v1214_v39 = vmul.f32 %v3314_v21, %v2385_v41  ;;  %v1226_v20 = vmul.f32 %v3315_v7, %v2439_v11  ;;  %v869_v56 = vstv %s2718_s17  ;;  %v1237_v1 = vadd.f32 %v1235_v50, %v1229_v51  ;;  %s1294_s4 = sshll.u32 %s1540_s3, 4  ;;  %s1295_s4 = int_to_ptr.vmem [resolvable:$true] %s1294_s4 }
 0x151   :  { %v1210_v3 = vadd.f32 %v1208_v5, %v1198_v34  ;;  %v3317_v47 = vmov %v3306_v24  ;;  %v875_v55 = vstv %s2726_s9  ;;  %v3318_v36 = vstv %s3311_s25  ;;  %v3320_v24 = vld [vmem:[#allocation77_spill] sm:$0xff]  ;;  %s1490_s2 = scalar_lea.vmem %s1295_s4, 64  ;;  %p1495_p6 = scmp.lt.s32.totalorder %s1295_s4, %s1295_s4 }
 0x152   :  { %v1232_v49 = vmul.f32 %v3317_v47, %v2470_v13  ;;  %v1216_v14 = vadd.f32 %v1214_v39, %v1204_v32  ;;  %v782_v23 = vmul.f32 %v3318_v36, %v2363_v9  ;;  %v3319_v25 = vmov %v3318_v36  ;;  %1240 = vrot.lane.b32.xlu1 %v1237_v1, %s1539_s15  ;;  %p1491_p5 = scmp.ne.s32.totalorder %s1295_s4, %s1490_s2  ;;  %p1496_p7 = scmp.lt.s32.totalorder %s1490_s2, %s1490_s2 }
 0x153   :  { %v783_v40 = vmul.f32 %v3319_v25, %v2366_v33  ;;  %v3321_v17 = vstv %s3312_s5  ;;  %v1222_v30 = vadd.f32 %v1220_v35, %v1210_v3  ;;  %v790_v60 = vmul.f32 %v789_v29, %v3263_v37 }
 0x154   :  { %v786_v44 = vmul.f32 %v3321_v17, %v3320_v24  ;;  %v3324_v46 = vmov %v3321_v17  ;;  %v791_v9 = vmul.f32 %v789_v29, %v3281_v10  ;;  %v1228_v58 = vadd.f32 %v1226_v20, %v1216_v14  ;;  %v3332_v14 = vld [vmem:[#allocation76_spill] sm:$0xff]  ;;  %p1497_p8 = por %p1496_p7, %p1495_p6 }
 0x155   :  { %v787_v8 = vmul.f32 %v3324_v46, %v3323_v62  ;;  %v3325_v33 = vstv %s3316_s11  ;;  %v802_v59 = vmul.f32 %v801_v15, %v3271_v19  ;;  %v1234_v51 = vadd.f32 %v1232_v49, %v1222_v30 }
 0x156   :  { %v796_v5 = vmul.f32 %v3325_v33, %v3265_v26  ;;  %v3326_v57 = vmov %v3325_v33  ;;  %v792_v50 = vadd.f32 %v790_v60, %v782_v23  ;;  %v793_v34 = vadd.f32 %v791_v9, %v783_v40  ;;  %p1498_p9 = pnand %p1497_p8, %p1491_p5 }
 0x157   :  { %v797_v6 = vmul.f32 %v3326_v57, %v3283_v4  ;;  %v803_v31 = vmul.f32 %v801_v15, %v3247_v63  ;;  %v3328_v29 = vstv %s3322_s1  ;;  %v1236_v21 = vadd.f32 %v1234_v51, %v1228_v58  ;;  %v638_v57 = vld [vmem:[#allocation8 + $0x2] sm:$0x3]  ;;  %v3335_v51 = vld [vmem:[#allocation39_spill] sm:$0xff] }
 0x158   :  { %v798_v37 = vadd.f32 %v796_v5, %v786_v44  ;;  %v808_v10 = vmul.f32 %v3328_v29, %v3268_v45  ;;  %v3329_v32 = vmov %v3328_v29  ;;  %v804_v39 = vadd.f32 %v802_v59, %v792_v50  ;;  %v764_v5 = vld [vmem:[#allocation8 + $0x4] sm:$0x3] }
 0x159   :  { %v799_v35 = vadd.f32 %v797_v6, %v787_v8  ;;  %v809_v26 = vmul.f32 %v3329_v32, %v3287_v12  ;;  %v805_v4 = vadd.f32 %v803_v31, %v793_v34  ;;  %v846_v19 = vmul.f32 %v845_v52, %v2331_v27  ;;  %1238 = vrot.lane.b32.xlu0 %v1236_v21, %s1539_s15  ;;  %v1120_v34 = vld [vmem:[#allocation8 + $0xa] sm:$0x3] }
 0x15a   :  { %v810_v7 = vadd.f32 %v808_v10, %v798_v37  ;;  %v847_v1 = vmul.f32 %v845_v52, %v2334_v2  ;;  %v3330_v63 = vstv %s3327_s19  ;;  %v826_v3 = vadd.f32 %v3310_v48, %v804_v39 }
 0x15b   :  { %v811_v20 = vadd.f32 %v809_v26, %v799_v35  ;;  %v852_v15 = vmul.f32 %v3330_v63, %v3275_v53  ;;  %v827_v47 = vadd.f32 %v823_v38, %v805_v4  ;;  %v3331_v45 = vmov %v3330_v63 }
 0x15c   :  { %v853_v49 = vmul.f32 %v3331_v45, %v3255_v18  ;;  %v858_v12 = vmul.f32 %v857_v0, %v2385_v41  ;;  %v842_v36 = vadd.f32 %v3332_v14, %v810_v7  ;;  %v3333_v27 = vcombine.high %v3332_v14, %v3332_v14 }
 0x15d   :  { %v859_v2 = vmul.f32 %v857_v0, %v2388_v42  ;;  %v864_v52 = vmul.f32 %v863_v16, %v2411_v28  ;;  %v848_v53 = vadd.f32 %v846_v19, %v826_v3  ;;  %v849_v25 = vadd.f32 %v847_v1, %v827_v47  ;;  %v1246_v19 = vld [vmem:[#allocation8 + $0xc] sm:$0x3] }
 0x15e   :  { %v843_v23 = vadd.f32 %v3333_v27, %v811_v20  ;;  %v865_v48 = vmul.f32 %v863_v16, %v2414_v54  ;;  %v870_v38 = vmul.f32 %v869_v56, %v2439_v11  ;;  %v854_v40 = vadd.f32 %v852_v15, %v842_v36 }
 0x15f   :  { %v871_v41 = vmul.f32 %v869_v56, %v2442_v61  ;;  %v876_v24 = vmul.f32 %v875_v55, %v2470_v13  ;;  %v860_v17 = vadd.f32 %v858_v12, %v848_v53  ;;  %v861_v44 = vadd.f32 %v859_v2, %v849_v25  ;;  %v512_v13 = vld [vmem:[#allocation8] sm:$0x3] }
 0x160   :  { %v855_v18 = vadd.f32 %v853_v49, %v843_v23  ;;  %v877_v30 = vmul.f32 %v875_v55, %v2473_v22  ;;  %v866_v62 = vadd.f32 %v864_v52, %v854_v40  ;;  %v994_v22 = vld [vmem:[#allocation8 + $0x8] sm:$0x3]  ;;  %v3334_v55 = vld [vmem:[#allocation38_spill] sm:$0xff]  ;;  %v521_v50 = vrot.slane %v512_v13, %v3335_v51 }
 0x161   :  { %v872_v0 = vadd.f32 %v870_v38, %v860_v17  ;;  %v873_v28 = vadd.f32 %v871_v41, %v861_v44  ;;  %v517_v59 = vrot.slane %v512_v13, %v3334_v55  ;;  %v769_v31 = vrot.slane %v764_v5, %v3334_v55 }
 0x162   :  { %v867_v42 = vadd.f32 %v865_v48, %v855_v18  ;;  %v878_v46 = vadd.f32 %v876_v24, %v866_v62  ;;  %v773_v37 = vrot.slane %v764_v5, %v3335_v51  ;;  %v643_v35 = vrot.slane %v638_v57, %v3334_v55 }
 0x163   :  { %v647_v29 = vrot.slane %v638_v57, %v3335_v51  ;;  %v999_v10 = vrot.slane %v994_v22, %v3334_v55  ;;  %v1003_v32 = vrot.slane %v994_v22, %v3335_v51  ;;  %v1125_v4 = vrot.slane %v1120_v34, %v3334_v55 }
 0x164   :  { %v879_v8 = vadd.f32 %v877_v30, %v867_v42  ;;  %v880_v60 = vadd.f32 %v878_v46, %v872_v0  ;;  %v1129_v1 = vrot.slane %v1120_v34, %v3335_v51  ;;  %v1251_v14 = vrot.slane %v1246_v19, %v3334_v55 }
 0x165   :  { %v1255_v36 = vrot.slane %v1246_v19, %v3335_v51 }
 0x166   :  { %v881_v54 = vadd.f32 %v879_v8, %v873_v28 }
 0x18b   :  { %v508_v16 = vpop.permute.xlu1 %507  ;;  %v506_v11 = vpop.permute.xlu0 %505 }
 0x18c   :  { %v510_v15 = vsel %vm509_vm11, %v506_v11, %v508_v16  ;;  %v511_v3 = vsel %vm509_vm11, %v508_v16, %v506_v11 }
 0x18d   :  { %v524_v53 = vmul.f32 %v517_v59, %v511_v3  ;;  %v525_v25 = vmul.f32 %v521_v50, %v510_v15 }
 0x18f   :  { %v759_v9 = vpop.permute.xlu1 %758 }
 0x195   :  { %v757_v58 = vpop.permute.xlu0 %756 }
 0x196   :  { %v761_v21 = vsel %vm760_vm12, %v757_v58, %v759_v9  ;;  %v762_v39 = vsel %vm760_vm12, %v759_v9, %v757_v58 }
 0x197   :  { %v776_v49 = vmul.f32 %v769_v31, %v762_v39  ;;  %v777_v12 = vmul.f32 %v773_v37, %v761_v21 }
 0x199   :  { %v778_v18 = vadd.f32 %v776_v49, %v524_v53  ;;  %v779_v41 = vadd.f32 %v777_v12, %v525_v25 }
 0x19d   :  { %v633_v33 = vpop.permute.xlu1 %632 }
 0x1a2   :  { %v631_v61 = vpop.permute.xlu0 %630 }
 0x1a3   :  { %v635_v7 = vsel %vm634_vm13, %v631_v61, %v633_v33  ;;  %v636_v20 = vsel %vm634_vm13, %v633_v33, %v631_v61 }
 0x1a4   :  { %v650_v27 = vmul.f32 %v643_v35, %v636_v20  ;;  %v651_v23 = vmul.f32 %v647_v29, %v635_v7 }
 0x1a6   :  { %v882_v30 = vadd.f32 %v880_v60, %v650_v27  ;;  %v883_v62 = vadd.f32 %v881_v54, %v651_v23 }
 0x1a7   :  { %v989_v56 = vpop.permute.xlu1 %988 }
 0x1ac   :  { %v987_v6 = vpop.permute.xlu0 %986 }
 0x1ad   :  { %v991_v47 = vsel %vm990_vm14, %v987_v6, %v989_v56  ;;  %v992_v45 = vsel %vm990_vm14, %v989_v56, %v987_v6 }
 0x1ae   :  { %v1006_v48 = vmul.f32 %v999_v10, %v991_v47  ;;  %v1007_v38 = vmul.f32 %v1003_v32, %v992_v45 }
 0x1b0   :  { %v1008_v28 = vadd.f32 %v1006_v48, %v778_v18  ;;  %v1009_v46 = vadd.f32 %v1007_v38, %v779_v41 }
 0x1b4   :  { %v1115_v26 = vpop.permute.xlu1 %1114 }
 0x1bd   :  { %v1113_v63 = vpop.permute.xlu0 %1112 }
 0x1be   :  { %v1117_v2 = vsel %vm1116_vm15, %v1113_v63, %v1115_v26  ;;  %v1118_v52 = vsel %vm1116_vm15, %v1115_v26, %v1113_v63 }
 0x1bf   :  { %v1132_v24 = vmul.f32 %v1125_v4, %v1117_v2  ;;  %v1133_v17 = vmul.f32 %v1129_v1, %v1118_v52 }
 0x1c1   :  { %v1134_v11 = vadd.f32 %v1132_v24, %v882_v30  ;;  %v1135_v9 = vadd.f32 %v1133_v17, %v883_v62 }
 0x1c4   :  { %v1241_v40 = vpop.permute.xlu1 %1240 }
 0x1cb   :  { %v1239_v44 = vpop.permute.xlu0 %1238 }
 0x1cc   :  { %v1243_v42 = vsel %vm1242_vm0, %v1239_v44, %v1241_v40  ;;  %v1244_v0 = vsel %vm1242_vm0, %v1241_v40, %v1239_v44 }
 0x1cd   :  { %v1258_v8 = vmul.f32 %v1251_v14, %v1243_v42  ;;  %v1259_v16 = vmul.f32 %v1255_v36, %v1244_v0 }
 0x1cf   :  { %v1260_v58 = vadd.f32 %v1258_v8, %v1008_v28  ;;  %v1261_v33 = vadd.f32 %v1259_v16, %v1009_v46 }
 0x1d1   :  { %v1262_v61 = vadd.f32 %v1260_v58, %v1134_v11  ;;  %v1263_v56 = vadd.f32 %v1261_v33, %v1135_v9 }
 0x1d3   :  { %v1402_v13 = vmul.f32 -1.442695, %v1262_v61  ;;  %v1403_v5 = vmul.f32 -1.442695, %v1263_v56 }
 0x1d5   :  { %1428 = vpow2.f32 %v1402_v13 }
 0x1d6   :  { %1430 = vpow2.f32 %v1403_v5 }
 0x1df   :  { %v1429_v60 = vpop.eup %1428 }
 0x1e0   :  { %v1431_v54 = vpop.eup %1430  ;;  %v1270_v57 = vadd.f32 1.0, %v1429_v60 }
 0x1e1   :  { %v1271_v6 = vadd.f32 1.0, %v1431_v54 }
 0x1e2   :  { %1432 = vrcp.f32 %v1270_v57 }
 0x1e3   :  { %1434 = vrcp.f32 %v1271_v6 }
 0x1ec   :  { %v1433_v43 = vpop.eup %1432 }
 0x1ed   :  { %v1435_v22 = vpop.eup %1434 }
 0x1ee   :  { %v1278_v55 = vcombine.low %v1433_v43, %v1435_v22 }
 0x1f0   :  { %1404 = vst.sshfl [vmem:[#allocation11] sm:$0x33 pattern:$0x76325410] %v1278_v55 }
 0x1f1   :  { %1501 = shalt.err (!%p1498_p9)
}
 0x1f2   :  { %s3336_s27 = sld [smem:[#allocation96_spill]] }
 0x1f8   :  { %s1502_s30 = scalar_lea.hbm %s3336_s27, 64 }
 0x1f9   :  { %p1503_p10 = scmp.ne.s32.totalorder %s3336_s27, %s1502_s30  ;;  %p1506_p11 = scmp.lt.u32.totalorder %s1502_s30, %s3336_s27 }
 0x1fb   :  { %p1508_p12 = pnand %p1506_p11, %p1503_p10 }
 0x1fd   :  { %1511 = shalt.err (!%p1508_p12)
}
 0x1fe   :  { %1297 = dma.vmem_to_hbm [thread:$0]  %s1295_s4, 64, %s3336_s27, [#allocation6]  }
 0x1ff   :  { %1518 = dma.done.wait [#allocation6], 64  }
 0x200   :  { %1519 = vsyncadd [#allocation6], 4294967232 }
 0x201   :  { %1301 = vsyncpa [#allocation5], 1 }
 0x202   :  { %1302 = vsyncpa [#allocation10], 1 }
 0x203   :  { %1303 = vsyncpa [#allocation6], 1 }
 0x204   :  { %1304 = vsyncpa [#allocation7], 1 }

</bundles_post_ra>
